<compile_context>
chip_gen: v7x
topology: tpu7x:2x2x1
jax: 0.10.0
libtpu: 0.0.40
codegen_flags: <defaults>
</compile_context>

<pallas_src>
import functools

import jax
import jax.numpy as jnp
from jax import lax
from jax.experimental import pallas as pl
from jax.experimental.pallas import tpu as pltpu

# ---------------- config (small synthetic ViT) ----------------
PATCH = 8          # patch size of the conv stem (stride == kernel == PATCH)
D = 32             # transformer width
HEADS = 4          # attention heads
HD = D // HEADS    # head dim
LAYERS = 2         # transformer blocks
MLP = 4 * D        # MLP hidden dim
OUT_DIM = 16       # image-feature projection dim
LANE = 128         # lane-dense padding of the output projection
EPS = 1e-5         # LayerNorm eps (PyTorch default)
NEG = -1e9         # additive mask for padded key columns


def _ln(x, g, b):
    """LayerNorm over the last axis (f32). g/b are (1, D) and broadcast."""
    mu = jnp.mean(x, axis=-1, keepdims=True)
    var = jnp.mean(jnp.square(x - mu), axis=-1, keepdims=True)
    return (x - mu) * lax.rsqrt(var + EPS) * g + b


# ---------------- fused kernel (one image per grid step) ----------------
def clip_vit_kernel(
    patch_ref,                     # (1, S_pad, C*P*P) bf16; row 0 = cls slot (zeros)
    tok_ref,                       # (S_pad, D)        f32; pos embed (+ cls on row 0)
    wpatch_ref,                    # (C*P*P, D)        bf16, conv1 weight flattened
    gpre_ref, bpre_ref,            # (1, D)            f32, ln_pre
    ln1g_ref, ln1b_ref,            # (L, 1, D)         f32
    wqkv_ref, bqkv_ref,            # (L, D, 3D) bf16 / (L, 1, 3D) f32 (q-scale folded)
    wo_ref, bo_ref,                # (L, D, D)  bf16 / (L, 1, D)  f32
    ln2g_ref, ln2b_ref,            # (L, 1, D)         f32
    w1_ref, bm1_ref,               # (L, D, MLP) bf16 / (L, 1, MLP) f32
    w2_ref, bm2_ref,               # (L, MLP, D) bf16 / (L, 1, D)   f32
    gpost_ref, bpost_ref,          # (1, D)            f32, ln_post
    proj_ref,                      # (D, 128)          bf16, lane-padded projection
    o_ref,                         # (1, 1, 128)       f32
    *, s_real,
):
    """Fused ViT encoder for one image: patch-embed -> L pre-LN blocks -> head."""
    S_pad, Dm = tok_ref.shape
    L = wqkv_ref.shape[0]
    H, HDm = HEADS, HD
    bf16, f32 = jnp.bfloat16, jnp.float32

    # compile-time key-padding bias (replaces the DMAed (B*S, B*S) mask)
    key_bias = jnp.where(
        lax.broadcasted_iota(jnp.int32, (1, 1, S_pad), 2) < s_real, 0.0, NEG
    ).astype(f32)

    # --- patch embed (stride-P conv as one matmul) + cls/pos + ln_pre
    x = jnp.dot(patch_ref[0], wpatch_ref[...], preferred_element_type=f32)  # (S,D)
    x = x + tok_ref[...]
    x = _ln(x, gpre_ref[...], bpre_ref[...])

    # TODO(synk): at real CLIP widths (ViT-H/14) stream one layer's weights per
    # grid step (layer axis = 'arbitrary', pl.Buffered(2-3)) instead of keeping
    # all layers resident in VMEM; at this toy size everything fits.
    for li in range(L):   # static unroll over transformer blocks
        # ---- multi-head self-attention ----
        xn = _ln(x, ln1g_ref[li], ln1b_ref[li]).astype(bf16)                 # (S,D)
        qkv = jnp.dot(xn, wqkv_ref[li], preferred_element_type=f32) + bqkv_ref[li]

        # per-head lane slices stacked on a leading head axis (no mask, no
        # broadcast of xn; 1/sqrt(HD) already folded into the q columns)
        qh = jnp.stack([qkv[:, h * HDm:(h + 1) * HDm]
                        for h in range(H)]).astype(bf16)                     # (H,S,HD)
        kh = jnp.stack([qkv[:, Dm + h * HDm:Dm + (h + 1) * HDm]
                        for h in range(H)]).astype(bf16)
        vh = jnp.stack([qkv[:, 2 * Dm + h * HDm:2 * Dm + (h + 1) * HDm]
                        for h in range(H)]).astype(bf16)

        s = lax.dot_general(qh, kh, (((2,), (2,)), ((0,), (0,))),
                            preferred_element_type=f32)                     # (H,S,S)
        s = s + key_bias
        s = s - jnp.max(s, axis=-1, keepdims=True)
        e = jnp.exp(s)
        p = e * pl.reciprocal(jnp.sum(e, axis=-1, keepdims=True), approx=True)

        ctx3 = lax.dot_general(p.astype(bf16), vh, (((2,), (1,)), ((0,), (0,))),
                               preferred_element_type=f32)                  # (H,S,HD)
        # heads concatenated along lanes -> single (S, D) @ (D, D) out-proj
        ctx = jnp.concatenate([ctx3[h] for h in range(H)], axis=1)          # (S,D)
        attn = jnp.dot(ctx.astype(bf16), wo_ref[li],
                       preferred_element_type=f32) + bo_ref[li]
        x = x + attn

        # ---- MLP with QuickGELU (as in OpenAI CLIP), f32 elementwise ----
        xn2 = _ln(x, ln2g_ref[li], ln2b_ref[li]).astype(bf16)
        h1 = jnp.dot(xn2, w1_ref[li], preferred_element_type=f32) + bm1_ref[li]
        h1 = h1 * jax.nn.sigmoid(1.702 * h1)
        x = x + jnp.dot(h1.astype(bf16), w2_ref[li],
                        preferred_element_type=f32) + bm2_ref[li]

    # ---- head: cls token is row 0 of this image, ln_post, lane-dense proj ----
    cls = _ln(x[0:1, :], gpost_ref[...], bpost_ref[...])                    # (1,D)
    o_ref[0] = jnp.dot(cls.astype(bf16), proj_ref[...],
                       preferred_element_type=f32)                          # (1,128)


# ---------------- parameters ----------------
def init_params(key, C, S):
    p_dim = C * PATCH * PATCH
    ks = jax.random.split(key, 4 + 6 * LAYERS)
    sc = 0.02
    f32, bf16 = jnp.float32, jnp.bfloat16

    def rnd(k, shape):
        return sc * jax.random.normal(k, shape, f32)

    q_scale = 1.0 / (HD ** 0.5)
    wqkv, wo, w1, w2 = [], [], [], []
    for li in range(LAYERS):
        kq, kk, kv, ko, k1, k2 = ks[4 + 6 * li: 4 + 6 * (li + 1)]
        wq = rnd(kq, (D, D)) * q_scale      # fold 1/sqrt(HD) into the q columns
        wk = rnd(kk, (D, D))
        wv = rnd(kv, (D, D))
        wqkv.append(jnp.concatenate([wq, wk, wv], axis=1))        # (D, 3D)
        wo.append(rnd(ko, (D, D)))
        w1.append(rnd(k1, (D, MLP)))
        w2.append(rnd(k2, (MLP, D)))

    # TODO(synk): with real CLIP weights, wqkv = in_proj_weight.T column-blocks
    # (q columns and q bias additionally scaled by 1/sqrt(HD)), wo =
    # out_proj.weight.T, and conv1.weight (D,C,P,P) -> wpatch = reshape(D,-1).T.
    return {
        "wpatch": rnd(ks[0], (p_dim, D)).astype(bf16),   # conv1, no bias in CLIP
        "cls": rnd(ks[1], (1, D)),
        "pos": rnd(ks[2], (S, D)),
        "g_pre": jnp.ones((1, D), f32), "b_pre": jnp.zeros((1, D), f32),
        "g_post": jnp.ones((1, D), f32), "b_post": jnp.zeros((1, D), f32),
        "proj": rnd(ks[3], (D, OUT_DIM)),
        "ln1_g": jnp.ones((LAYERS, 1, D), f32), "ln1_b": jnp.zeros((LAYERS, 1, D), f32),
        "wqkv": jnp.stack(wqkv).astype(bf16),
        "bqkv": jnp.zeros((LAYERS, 1, 3 * D), f32),
        "wo": jnp.stack(wo).astype(bf16),
        "bo": jnp.zeros((LAYERS, 1, D), f32),
        "ln2_g": jnp.ones((LAYERS, 1, D), f32), "ln2_b": jnp.zeros((LAYERS, 1, D), f32),
        "w1": jnp.stack(w1).astype(bf16), "bm1": jnp.zeros((LAYERS, 1, MLP), f32),
        "w2": jnp.stack(w2).astype(bf16), "bm2": jnp.zeros((LAYERS, 1, D), f32),
    }


# ---------------- wrapper ----------------
def clip_encode_image(image, params):
    """ClipModel.forward: image (B, C, H, W) NCHW -> (B, OUT_DIM) features."""
    B, C, Himg, Wimg = image.shape
    gh, gw = Himg // PATCH, Wimg // PATCH
    N = gh * gw
    S = N + 1
    S_pad = max(8, ((S + 7) // 8) * 8)      # full (8,*) sublane tiles
    p_dim = C * PATCH * PATCH

    # glue: NCHW -> (B, S_pad, C*P*P) patch rows; row 0 per image is the cls
    # slot (zero patch row), rows >= S are padding masked out of attention.
    patches = image.reshape(B, C, gh, PATCH, gw, PATCH)
    patches = patches.transpose(0, 2, 4, 1, 3, 5).reshape(B, N, p_dim)
    slab = jnp.zeros((B, S_pad, p_dim), jnp.float32).at[:, 1:S, :].set(patches)
    slab = slab.astype(jnp.bfloat16)        # halve the biggest input's DMA bytes

    # per-token additive embedding: pos for real tokens, + cls on token 0.
    tok = jnp.zeros((S_pad, D), jnp.float32).at[:S, :].set(params["pos"])
    tok = tok.at[0, :].add(params["cls"][0])

    # lane-dense output: pad the projection to 128 output lanes, slice after.
    proj_pad = jnp.zeros((D, LANE), jnp.float32).at[:, :OUT_DIM].set(params["proj"])
    proj_pad = proj_pad.astype(jnp.bfloat16)

    inputs = (slab, tok, params["wpatch"],
              params["g_pre"], params["b_pre"],
              params["ln1_g"], params["ln1_b"],
              params["wqkv"], params["bqkv"],
              params["wo"], params["bo"],
              params["ln2_g"], params["ln2_b"],
              params["w1"], params["bm1"], params["w2"], params["bm2"],
              params["g_post"], params["b_post"], proj_pad)

    def rep(a):   # full-array block, same for every grid step (weights)
        zeros = (0,) * a.ndim
        return pl.BlockSpec(a.shape, lambda b, _z=zeros: _z)

    in_specs = [pl.BlockSpec((1, S_pad, p_dim), lambda b: (b, 0, 0))]
    in_specs += [rep(a) for a in inputs[1:]]
    out_spec = pl.BlockSpec((1, 1, LANE), lambda b: (b, 0, 0))

    # advisory cost estimate for XLA's scheduler
    fl_layer = (2 * S_pad * D * 3 * D + 4 * S_pad * S_pad * D
                + 2 * S_pad * D * D + 4 * S_pad * D * MLP)
    flops = B * (2 * S_pad * p_dim * D + LAYERS * fl_layer + 2 * D * LANE)
    trans = B * LAYERS * (HEADS * S_pad * S_pad + S_pad * MLP)
    bytes_acc = sum(int(a.size) * a.dtype.itemsize for a in inputs) + B * LANE * 4
    cost = pl.CostEstimate(flops=flops, transcendentals=trans,
                           bytes_accessed=bytes_acc)

    out = pl.pallas_call(
        functools.partial(clip_vit_kernel, s_real=S),
        out_shape=jax.ShapeDtypeStruct((B, 1, LANE), jnp.float32),
        grid=(B,),                           # one image per step; v7x TCs split B
        in_specs=in_specs,
        out_specs=out_spec,
        compiler_params=pltpu.CompilerParams(
            dimension_semantics=("parallel",),
            vmem_limit_bytes=32 * 1024 * 1024),
        cost_estimate=cost,
    )(*inputs)

    return out[:, 0, :OUT_DIM]


if __name__ == "__main__":
    key = jax.random.PRNGKey(0)
    k_img, k_par = jax.random.split(key)

    # small shapes consistent with the module: batch=2, 3-channel 16x16 image
    image = jax.random.normal(k_img, (2, 3, 16, 16), jnp.float32)
    S = (16 // PATCH) * (16 // PATCH) + 1
    params = init_params(k_par, C=3, S=S)

    # TODO(synk): pretrained CLIP weights (clip.load) cannot be loaded here;
    # deterministic random weights reproduce the forward-pass structure only.
    encode = jax.jit(clip_encode_image)
    feat = jax.block_until_ready(encode(image, params))
    assert feat.shape == (2, OUT_DIM) and feat.dtype == jnp.float32
    assert bool(jnp.all(jnp.isfinite(feat)))
    print("KERNEL_OK")
</pallas_src>

<mosaic_0001>
module attributes {stable_mosaic.version = 11 : i64} {
  func.func @clip_vit_kernel(%arg0: i32, %arg1: memref<1x8x192xbf16, #tpu.memory_space<vmem>>, %arg2: memref<8x32xf32, #tpu.memory_space<vmem>>, %arg3: memref<192x32xbf16, #tpu.memory_space<vmem>>, %arg4: memref<1x32xf32, #tpu.memory_space<vmem>>, %arg5: memref<1x32xf32, #tpu.memory_space<vmem>>, %arg6: memref<2x1x32xf32, #tpu.memory_space<vmem>>, %arg7: memref<2x1x32xf32, #tpu.memory_space<vmem>>, %arg8: memref<2x32x96xbf16, #tpu.memory_space<vmem>>, %arg9: memref<2x1x96xf32, #tpu.memory_space<vmem>>, %arg10: memref<2x32x32xbf16, #tpu.memory_space<vmem>>, %arg11: memref<2x1x32xf32, #tpu.memory_space<vmem>>, %arg12: memref<2x1x32xf32, #tpu.memory_space<vmem>>, %arg13: memref<2x1x32xf32, #tpu.memory_space<vmem>>, %arg14: memref<2x32x128xbf16, #tpu.memory_space<vmem>>, %arg15: memref<2x1x128xf32, #tpu.memory_space<vmem>>, %arg16: memref<2x128x32xbf16, #tpu.memory_space<vmem>>, %arg17: memref<2x1x32xf32, #tpu.memory_space<vmem>>, %arg18: memref<1x32xf32, #tpu.memory_space<vmem>>, %arg19: memref<1x32xf32, #tpu.memory_space<vmem>>, %arg20: memref<32x128xbf16, #tpu.memory_space<vmem>>, %arg21: memref<1x1x128xf32, #tpu.memory_space<vmem>>) attributes {dimension_semantics = [#tpu.dimension_semantics<parallel>], iteration_bounds = array<i64: 2>, scalar_prefetch = 0 : i64, scratch_operands = 0 : i64, tpu.core_type = #tpu.core_type<tc>, window_params = [{transform_indices = @transform_0, window_bounds = array<i64: 1, 8, 192>}, {pipeline_mode = #tpu.pipeline_mode<synchronous>, transform_indices = @transform_1, window_bounds = array<i64: 8, 32>}, {pipeline_mode = #tpu.pipeline_mode<synchronous>, transform_indices = @transform_2, window_bounds = array<i64: 192, 32>}, {pipeline_mode = #tpu.pipeline_mode<synchronous>, transform_indices = @transform_3, window_bounds = array<i64: 1, 32>}, {pipeline_mode = #tpu.pipeline_mode<synchronous>, transform_indices = @transform_4, window_bounds = array<i64: 1, 32>}, {pipeline_mode = #tpu.pipeline_mode<synchronous>, transform_indices = @transform_5, window_bounds = array<i64: 2, 1, 32>}, {pipeline_mode = #tpu.pipeline_mode<synchronous>, transform_indices = @transform_6, window_bounds = array<i64: 2, 1, 32>}, {pipeline_mode = #tpu.pipeline_mode<synchronous>, transform_indices = @transform_7, window_bounds = array<i64: 2, 32, 96>}, {pipeline_mode = #tpu.pipeline_mode<synchronous>, transform_indices = @transform_8, window_bounds = array<i64: 2, 1, 96>}, {pipeline_mode = #tpu.pipeline_mode<synchronous>, transform_indices = @transform_9, window_bounds = array<i64: 2, 32, 32>}, {pipeline_mode = #tpu.pipeline_mode<synchronous>, transform_indices = @transform_10, window_bounds = array<i64: 2, 1, 32>}, {pipeline_mode = #tpu.pipeline_mode<synchronous>, transform_indices = @transform_11, window_bounds = array<i64: 2, 1, 32>}, {pipeline_mode = #tpu.pipeline_mode<synchronous>, transform_indices = @transform_12, window_bounds = array<i64: 2, 1, 32>}, {pipeline_mode = #tpu.pipeline_mode<synchronous>, transform_indices = @transform_13, window_bounds = array<i64: 2, 32, 128>}, {pipeline_mode = #tpu.pipeline_mode<synchronous>, transform_indices = @transform_14, window_bounds = array<i64: 2, 1, 128>}, {pipeline_mode = #tpu.pipeline_mode<synchronous>, transform_indices = @transform_15, window_bounds = array<i64: 2, 128, 32>}, {pipeline_mode = #tpu.pipeline_mode<synchronous>, transform_indices = @transform_16, window_bounds = array<i64: 2, 1, 32>}, {pipeline_mode = #tpu.pipeline_mode<synchronous>, transform_indices = @transform_17, window_bounds = array<i64: 1, 32>}, {pipeline_mode = #tpu.pipeline_mode<synchronous>, transform_indices = @transform_18, window_bounds = array<i64: 1, 32>}, {pipeline_mode = #tpu.pipeline_mode<synchronous>, transform_indices = @transform_19, window_bounds = array<i64: 32, 128>}, {transform_indices = @transform_20, window_bounds = array<i64: 1, 1, 128>}]} {
    %0 = tpu.iota {dimensions = array<i32: 2>} : vector<1x1x8xi32>
    %c5_i32 = arith.constant 5 : i32
    %1 = vector.broadcast %c5_i32 : i32 to vector<1x1x8xi32>
    %2 = arith.cmpi slt, %0, %1 : vector<1x1x8xi32>
    %cst = arith.constant 0.000000e+00 : f32
    %cst_0 = arith.constant -1.000000e+09 : f32
    %3 = vector.broadcast %cst : f32 to vector<1x1x8xf32>
    %4 = vector.broadcast %cst_0 : f32 to vector<1x1x8xf32>
    %5 = arith.select %2, %3, %4 : vector<1x1x8xi1>, vector<1x1x8xf32>
    %c0 = arith.constant 0 : index
    %c0_1 = arith.constant 0 : index
    %c0_2 = arith.constant 0 : index
    %6 = vector.load %arg1[%c0, %c0_1, %c0_2] : memref<1x8x192xbf16, #tpu.memory_space<vmem>>, vector<1x8x192xbf16>
    %7 = vector.shape_cast %6 : vector<1x8x192xbf16> to vector<8x192xbf16>
    %c0_3 = arith.constant 0 : index
    %c0_4 = arith.constant 0 : index
    %8 = vector.load %arg3[%c0_3, %c0_4] : memref<192x32xbf16, #tpu.memory_space<vmem>>, vector<192x32xbf16>
    %cst_5 = arith.constant dense<0.000000e+00> : vector<8x32xf32>
    %9 = tpu.matmul %7, %8, %cst_5 {dimension_numbers = #tpu.dot_dimension_numbers<[1], [0], [0], [1], [0, 0, 1, 1], [], []>} : vector<8x192xbf16>, vector<192x32xbf16>, vector<8x32xf32> -> vector<8x32xf32>
    %c0_6 = arith.constant 0 : index
    %c0_7 = arith.constant 0 : index
    %10 = vector.load %arg2[%c0_6, %c0_7] : memref<8x32xf32, #tpu.memory_space<vmem>>, vector<8x32xf32>
    %11 = arith.addf %9, %10 : vector<8x32xf32>
    %c0_8 = arith.constant 0 : index
    %c0_9 = arith.constant 0 : index
    %12 = vector.load %arg4[%c0_8, %c0_9] : memref<1x32xf32, #tpu.memory_space<vmem>>, vector<1x32xf32>
    %c0_10 = arith.constant 0 : index
    %c0_11 = arith.constant 0 : index
    %13 = vector.load %arg5[%c0_10, %c0_11] : memref<1x32xf32, #tpu.memory_space<vmem>>, vector<1x32xf32>
    %cst_12 = arith.constant dense<0.000000e+00> : vector<8xf32>
    %14 = vector.multi_reduction <add>, %11, %cst_12 [1] : vector<8x32xf32> to vector<8xf32>
    %15 = vector.shape_cast %14 : vector<8xf32> to vector<8x1xf32>
    %cst_13 = arith.constant 3.200000e+01 : f32
    %16 = vector.broadcast %cst_13 : f32 to vector<8x1xf32>
    %17 = arith.divf %15, %16 : vector<8x1xf32>
    %18 = vector.broadcast %17 : vector<8x1xf32> to vector<8x32xf32>
    %19 = arith.subf %11, %18 : vector<8x32xf32>
    %20 = arith.mulf %19, %19 : vector<8x32xf32>
    %cst_14 = arith.constant dense<0.000000e+00> : vector<8xf32>
    %21 = vector.multi_reduction <add>, %20, %cst_14 [1] : vector<8x32xf32> to vector<8xf32>
    %22 = vector.shape_cast %21 : vector<8xf32> to vector<8x1xf32>
    %cst_15 = arith.constant 3.200000e+01 : f32
    %23 = vector.broadcast %cst_15 : f32 to vector<8x1xf32>
    %24 = arith.divf %22, %23 : vector<8x1xf32>
    %25 = vector.broadcast %17 : vector<8x1xf32> to vector<8x32xf32>
    %26 = arith.subf %11, %25 : vector<8x32xf32>
    %cst_16 = arith.constant 9.99999974E-6 : f32
    %27 = vector.broadcast %cst_16 : f32 to vector<8x1xf32>
    %28 = arith.addf %24, %27 : vector<8x1xf32>
    %29 = math.rsqrt %28 : vector<8x1xf32>
    %30 = vector.broadcast %29 : vector<8x1xf32> to vector<8x32xf32>
    %31 = arith.mulf %26, %30 : vector<8x32xf32>
    %32 = vector.broadcast %12 : vector<1x32xf32> to vector<8x32xf32>
    %33 = arith.mulf %31, %32 : vector<8x32xf32>
    %34 = vector.broadcast %13 : vector<1x32xf32> to vector<8x32xf32>
    %35 = arith.addf %33, %34 : vector<8x32xf32>
    %c0_17 = arith.constant 0 : index
    %c0_18 = arith.constant 0 : index
    %c0_19 = arith.constant 0 : index
    %36 = vector.load %arg6[%c0_17, %c0_18, %c0_19] : memref<2x1x32xf32, #tpu.memory_space<vmem>>, vector<1x1x32xf32>
    %37 = vector.shape_cast %36 : vector<1x1x32xf32> to vector<1x32xf32>
    %c0_20 = arith.constant 0 : index
    %c0_21 = arith.constant 0 : index
    %c0_22 = arith.constant 0 : index
    %38 = vector.load %arg7[%c0_20, %c0_21, %c0_22] : memref<2x1x32xf32, #tpu.memory_space<vmem>>, vector<1x1x32xf32>
    %39 = vector.shape_cast %38 : vector<1x1x32xf32> to vector<1x32xf32>
    %cst_23 = arith.constant dense<0.000000e+00> : vector<8xf32>
    %40 = vector.multi_reduction <add>, %35, %cst_23 [1] : vector<8x32xf32> to vector<8xf32>
    %41 = vector.shape_cast %40 : vector<8xf32> to vector<8x1xf32>
    %cst_24 = arith.constant 3.200000e+01 : f32
    %42 = vector.broadcast %cst_24 : f32 to vector<8x1xf32>
    %43 = arith.divf %41, %42 : vector<8x1xf32>
    %44 = vector.broadcast %43 : vector<8x1xf32> to vector<8x32xf32>
    %45 = arith.subf %35, %44 : vector<8x32xf32>
    %46 = arith.mulf %45, %45 : vector<8x32xf32>
    %cst_25 = arith.constant dense<0.000000e+00> : vector<8xf32>
    %47 = vector.multi_reduction <add>, %46, %cst_25 [1] : vector<8x32xf32> to vector<8xf32>
    %48 = vector.shape_cast %47 : vector<8xf32> to vector<8x1xf32>
    %cst_26 = arith.constant 3.200000e+01 : f32
    %49 = vector.broadcast %cst_26 : f32 to vector<8x1xf32>
    %50 = arith.divf %48, %49 : vector<8x1xf32>
    %51 = vector.broadcast %43 : vector<8x1xf32> to vector<8x32xf32>
    %52 = arith.subf %35, %51 : vector<8x32xf32>
    %cst_27 = arith.constant 9.99999974E-6 : f32
    %53 = vector.broadcast %cst_27 : f32 to vector<8x1xf32>
    %54 = arith.addf %50, %53 : vector<8x1xf32>
    %55 = math.rsqrt %54 : vector<8x1xf32>
    %56 = vector.broadcast %55 : vector<8x1xf32> to vector<8x32xf32>
    %57 = arith.mulf %52, %56 : vector<8x32xf32>
    %58 = vector.broadcast %37 : vector<1x32xf32> to vector<8x32xf32>
    %59 = arith.mulf %57, %58 : vector<8x32xf32>
    %60 = vector.broadcast %39 : vector<1x32xf32> to vector<8x32xf32>
    %61 = arith.addf %59, %60 : vector<8x32xf32>
    %62 = arith.truncf %61 : vector<8x32xf32> to vector<8x32xbf16>
    %c0_28 = arith.constant 0 : index
    %c0_29 = arith.constant 0 : index
    %c0_30 = arith.constant 0 : index
    %63 = vector.load %arg8[%c0_28, %c0_29, %c0_30] : memref<2x32x96xbf16, #tpu.memory_space<vmem>>, vector<1x32x96xbf16>
    %64 = vector.shape_cast %63 : vector<1x32x96xbf16> to vector<32x96xbf16>
    %cst_31 = arith.constant dense<0.000000e+00> : vector<8x96xf32>
    %65 = tpu.matmul %62, %64, %cst_31 {dimension_numbers = #tpu.dot_dimension_numbers<[1], [0], [0], [1], [0, 0, 1, 1], [], []>} : vector<8x32xbf16>, vector<32x96xbf16>, vector<8x96xf32> -> vector<8x96xf32>
    %c0_32 = arith.constant 0 : index
    %c0_33 = arith.constant 0 : index
    %c0_34 = arith.constant 0 : index
    %66 = vector.load %arg9[%c0_32, %c0_33, %c0_34] : memref<2x1x96xf32, #tpu.memory_space<vmem>>, vector<1x1x96xf32>
    %67 = vector.shape_cast %66 : vector<1x1x96xf32> to vector<1x96xf32>
    %68 = vector.broadcast %67 : vector<1x96xf32> to vector<8x96xf32>
    %69 = arith.addf %65, %68 : vector<8x96xf32>
    %70 = vector.extract_strided_slice %69 {offsets = [0, 0], sizes = [8, 8], strides = [1, 1]} : vector<8x96xf32> to vector<8x8xf32>
    %71 = vector.extract_strided_slice %69 {offsets = [0, 8], sizes = [8, 8], strides = [1, 1]} : vector<8x96xf32> to vector<8x8xf32>
    %72 = vector.extract_strided_slice %69 {offsets = [0, 16], sizes = [8, 8], strides = [1, 1]} : vector<8x96xf32> to vector<8x8xf32>
    %73 = vector.extract_strided_slice %69 {offsets = [0, 24], sizes = [8, 8], strides = [1, 1]} : vector<8x96xf32> to vector<8x8xf32>
    %74 = vector.shape_cast %70 : vector<8x8xf32> to vector<1x8x8xf32>
    %75 = vector.shape_cast %71 : vector<8x8xf32> to vector<1x8x8xf32>
    %76 = vector.shape_cast %72 : vector<8x8xf32> to vector<1x8x8xf32>
    %77 = vector.shape_cast %73 : vector<8x8xf32> to vector<1x8x8xf32>
    %78 = tpu.concatenate %74, %75, %76, %77 in 0 : vector<1x8x8xf32>, vector<1x8x8xf32>, vector<1x8x8xf32>, vector<1x8x8xf32> -> vector<4x8x8xf32>
    %79 = arith.truncf %78 : vector<4x8x8xf32> to vector<4x8x8xbf16>
    %80 = vector.extract_strided_slice %69 {offsets = [0, 32], sizes = [8, 8], strides = [1, 1]} : vector<8x96xf32> to vector<8x8xf32>
    %81 = vector.extract_strided_slice %69 {offsets = [0, 40], sizes = [8, 8], strides = [1, 1]} : vector<8x96xf32> to vector<8x8xf32>
    %82 = vector.extract_strided_slice %69 {offsets = [0, 48], sizes = [8, 8], strides = [1, 1]} : vector<8x96xf32> to vector<8x8xf32>
    %83 = vector.extract_strided_slice %69 {offsets = [0, 56], sizes = [8, 8], strides = [1, 1]} : vector<8x96xf32> to vector<8x8xf32>
    %84 = vector.shape_cast %80 : vector<8x8xf32> to vector<1x8x8xf32>
    %85 = vector.shape_cast %81 : vector<8x8xf32> to vector<1x8x8xf32>
    %86 = vector.shape_cast %82 : vector<8x8xf32> to vector<1x8x8xf32>
    %87 = vector.shape_cast %83 : vector<8x8xf32> to vector<1x8x8xf32>
    %88 = tpu.concatenate %84, %85, %86, %87 in 0 : vector<1x8x8xf32>, vector<1x8x8xf32>, vector<1x8x8xf32>, vector<1x8x8xf32> -> vector<4x8x8xf32>
    %89 = arith.truncf %88 : vector<4x8x8xf32> to vector<4x8x8xbf16>
    %90 = vector.extract_strided_slice %69 {offsets = [0, 64], sizes = [8, 8], strides = [1, 1]} : vector<8x96xf32> to vector<8x8xf32>
    %91 = vector.extract_strided_slice %69 {offsets = [0, 72], sizes = [8, 8], strides = [1, 1]} : vector<8x96xf32> to vector<8x8xf32>
    %92 = vector.extract_strided_slice %69 {offsets = [0, 80], sizes = [8, 8], strides = [1, 1]} : vector<8x96xf32> to vector<8x8xf32>
    %93 = vector.extract_strided_slice %69 {offsets = [0, 88], sizes = [8, 8], strides = [1, 1]} : vector<8x96xf32> to vector<8x8xf32>
    %94 = vector.shape_cast %90 : vector<8x8xf32> to vector<1x8x8xf32>
    %95 = vector.shape_cast %91 : vector<8x8xf32> to vector<1x8x8xf32>
    %96 = vector.shape_cast %92 : vector<8x8xf32> to vector<1x8x8xf32>
    %97 = vector.shape_cast %93 : vector<8x8xf32> to vector<1x8x8xf32>
    %98 = tpu.concatenate %94, %95, %96, %97 in 0 : vector<1x8x8xf32>, vector<1x8x8xf32>, vector<1x8x8xf32>, vector<1x8x8xf32> -> vector<4x8x8xf32>
    %99 = arith.truncf %98 : vector<4x8x8xf32> to vector<4x8x8xbf16>
    %cst_35 = arith.constant dense<0.000000e+00> : vector<4x8x8xf32>
    %100 = tpu.matmul %79, %89, %cst_35 {dimension_numbers = #tpu.dot_dimension_numbers<[2], [2], [1], [1], [0, 0, 0, 1, 1, 1], [0], [0]>} : vector<4x8x8xbf16>, vector<4x8x8xbf16>, vector<4x8x8xf32> -> vector<4x8x8xf32>
    %101 = vector.broadcast %5 : vector<1x1x8xf32> to vector<4x8x8xf32>
    %102 = arith.addf %100, %101 : vector<4x8x8xf32>
    %cst_36 = arith.constant dense<0xFF800000> : vector<4x8xf32>
    %103 = vector.multi_reduction <maximumf>, %102, %cst_36 [2] : vector<4x8x8xf32> to vector<4x8xf32>
    %104 = vector.shape_cast %103 : vector<4x8xf32> to vector<4x8x1xf32>
    %105 = vector.broadcast %104 : vector<4x8x1xf32> to vector<4x8x8xf32>
    %106 = arith.subf %102, %105 : vector<4x8x8xf32>
    %107 = math.exp %106 : vector<4x8x8xf32>
    %cst_37 = arith.constant dense<0.000000e+00> : vector<4x8xf32>
    %108 = vector.multi_reduction <add>, %107, %cst_37 [2] : vector<4x8x8xf32> to vector<4x8xf32>
    %109 = vector.shape_cast %108 : vector<4x8xf32> to vector<4x8x1xf32>
    %110 = tpu.reciprocal %109 {approx = true} : vector<4x8x1xf32> -> vector<4x8x1xf32>
    %111 = vector.broadcast %110 : vector<4x8x1xf32> to vector<4x8x8xf32>
    %112 = arith.mulf %107, %111 : vector<4x8x8xf32>
    %113 = arith.truncf %112 : vector<4x8x8xf32> to vector<4x8x8xbf16>
    %cst_38 = arith.constant dense<0.000000e+00> : vector<4x8x8xf32>
    %114 = tpu.matmul %113, %99, %cst_38 {dimension_numbers = #tpu.dot_dimension_numbers<[2], [1], [1], [2], [0, 0, 0, 1, 1, 2], [0], [0]>} : vector<4x8x8xbf16>, vector<4x8x8xbf16>, vector<4x8x8xf32> -> vector<4x8x8xf32>
    %115 = vector.extract_strided_slice %114 {offsets = [0, 0, 0], sizes = [1, 8, 8], strides = [1, 1, 1]} : vector<4x8x8xf32> to vector<1x8x8xf32>
    %116 = vector.shape_cast %115 : vector<1x8x8xf32> to vector<8x8xf32>
    %117 = vector.extract_strided_slice %114 {offsets = [1, 0, 0], sizes = [1, 8, 8], strides = [1, 1, 1]} : vector<4x8x8xf32> to vector<1x8x8xf32>
    %118 = vector.shape_cast %117 : vector<1x8x8xf32> to vector<8x8xf32>
    %119 = vector.extract_strided_slice %114 {offsets = [2, 0, 0], sizes = [1, 8, 8], strides = [1, 1, 1]} : vector<4x8x8xf32> to vector<1x8x8xf32>
    %120 = vector.shape_cast %119 : vector<1x8x8xf32> to vector<8x8xf32>
    %121 = vector.extract_strided_slice %114 {offsets = [3, 0, 0], sizes = [1, 8, 8], strides = [1, 1, 1]} : vector<4x8x8xf32> to vector<1x8x8xf32>
    %122 = vector.shape_cast %121 : vector<1x8x8xf32> to vector<8x8xf32>
    %123 = tpu.concatenate %116, %118, %120, %122 in 1 : vector<8x8xf32>, vector<8x8xf32>, vector<8x8xf32>, vector<8x8xf32> -> vector<8x32xf32>
    %124 = arith.truncf %123 : vector<8x32xf32> to vector<8x32xbf16>
    %c0_39 = arith.constant 0 : index
    %c0_40 = arith.constant 0 : index
    %c0_41 = arith.constant 0 : index
    %125 = vector.load %arg10[%c0_39, %c0_40, %c0_41] : memref<2x32x32xbf16, #tpu.memory_space<vmem>>, vector<1x32x32xbf16>
    %126 = vector.shape_cast %125 : vector<1x32x32xbf16> to vector<32x32xbf16>
    %cst_42 = arith.constant dense<0.000000e+00> : vector<8x32xf32>
    %127 = tpu.matmul %124, %126, %cst_42 {dimension_numbers = #tpu.dot_dimension_numbers<[1], [0], [0], [1], [0, 0, 1, 1], [], []>} : vector<8x32xbf16>, vector<32x32xbf16>, vector<8x32xf32> -> vector<8x32xf32>
    %c0_43 = arith.constant 0 : index
    %c0_44 = arith.constant 0 : index
    %c0_45 = arith.constant 0 : index
    %128 = vector.load %arg11[%c0_43, %c0_44, %c0_45] : memref<2x1x32xf32, #tpu.memory_space<vmem>>, vector<1x1x32xf32>
    %129 = vector.shape_cast %128 : vector<1x1x32xf32> to vector<1x32xf32>
    %130 = vector.broadcast %129 : vector<1x32xf32> to vector<8x32xf32>
    %131 = arith.addf %127, %130 : vector<8x32xf32>
    %132 = arith.addf %35, %131 : vector<8x32xf32>
    %c0_46 = arith.constant 0 : index
    %c0_47 = arith.constant 0 : index
    %c0_48 = arith.constant 0 : index
    %133 = vector.load %arg12[%c0_46, %c0_47, %c0_48] : memref<2x1x32xf32, #tpu.memory_space<vmem>>, vector<1x1x32xf32>
    %134 = vector.shape_cast %133 : vector<1x1x32xf32> to vector<1x32xf32>
    %c0_49 = arith.constant 0 : index
    %c0_50 = arith.constant 0 : index
    %c0_51 = arith.constant 0 : index
    %135 = vector.load %arg13[%c0_49, %c0_50, %c0_51] : memref<2x1x32xf32, #tpu.memory_space<vmem>>, vector<1x1x32xf32>
    %136 = vector.shape_cast %135 : vector<1x1x32xf32> to vector<1x32xf32>
    %cst_52 = arith.constant dense<0.000000e+00> : vector<8xf32>
    %137 = vector.multi_reduction <add>, %132, %cst_52 [1] : vector<8x32xf32> to vector<8xf32>
    %138 = vector.shape_cast %137 : vector<8xf32> to vector<8x1xf32>
    %cst_53 = arith.constant 3.200000e+01 : f32
    %139 = vector.broadcast %cst_53 : f32 to vector<8x1xf32>
    %140 = arith.divf %138, %139 : vector<8x1xf32>
    %141 = vector.broadcast %140 : vector<8x1xf32> to vector<8x32xf32>
    %142 = arith.subf %132, %141 : vector<8x32xf32>
    %143 = arith.mulf %142, %142 : vector<8x32xf32>
    %cst_54 = arith.constant dense<0.000000e+00> : vector<8xf32>
    %144 = vector.multi_reduction <add>, %143, %cst_54 [1] : vector<8x32xf32> to vector<8xf32>
    %145 = vector.shape_cast %144 : vector<8xf32> to vector<8x1xf32>
    %cst_55 = arith.constant 3.200000e+01 : f32
    %146 = vector.broadcast %cst_55 : f32 to vector<8x1xf32>
    %147 = arith.divf %145, %146 : vector<8x1xf32>
    %148 = vector.broadcast %140 : vector<8x1xf32> to vector<8x32xf32>
    %149 = arith.subf %132, %148 : vector<8x32xf32>
    %cst_56 = arith.constant 9.99999974E-6 : f32
    %150 = vector.broadcast %cst_56 : f32 to vector<8x1xf32>
    %151 = arith.addf %147, %150 : vector<8x1xf32>
    %152 = math.rsqrt %151 : vector<8x1xf32>
    %153 = vector.broadcast %152 : vector<8x1xf32> to vector<8x32xf32>
    %154 = arith.mulf %149, %153 : vector<8x32xf32>
    %155 = vector.broadcast %134 : vector<1x32xf32> to vector<8x32xf32>
    %156 = arith.mulf %154, %155 : vector<8x32xf32>
    %157 = vector.broadcast %136 : vector<1x32xf32> to vector<8x32xf32>
    %158 = arith.addf %156, %157 : vector<8x32xf32>
    %159 = arith.truncf %158 : vector<8x32xf32> to vector<8x32xbf16>
    %c0_57 = arith.constant 0 : index
    %c0_58 = arith.constant 0 : index
    %c0_59 = arith.constant 0 : index
    %160 = vector.load %arg14[%c0_57, %c0_58, %c0_59] : memref<2x32x128xbf16, #tpu.memory_space<vmem>>, vector<1x32x128xbf16>
    %161 = vector.shape_cast %160 : vector<1x32x128xbf16> to vector<32x128xbf16>
    %cst_60 = arith.constant dense<0.000000e+00> : vector<8x128xf32>
    %162 = tpu.matmul %159, %161, %cst_60 {dimension_numbers = #tpu.dot_dimension_numbers<[1], [0], [0], [1], [0, 0, 1, 1], [], []>} : vector<8x32xbf16>, vector<32x128xbf16>, vector<8x128xf32> -> vector<8x128xf32>
    %c0_61 = arith.constant 0 : index
    %c0_62 = arith.constant 0 : index
    %c0_63 = arith.constant 0 : index
    %163 = vector.load %arg15[%c0_61, %c0_62, %c0_63] : memref<2x1x128xf32, #tpu.memory_space<vmem>>, vector<1x1x128xf32>
    %164 = vector.shape_cast %163 : vector<1x1x128xf32> to vector<1x128xf32>
    %165 = vector.broadcast %164 : vector<1x128xf32> to vector<8x128xf32>
    %166 = arith.addf %162, %165 : vector<8x128xf32>
    %cst_64 = arith.constant 1.702000e+00 : f32
    %167 = vector.broadcast %cst_64 : f32 to vector<8x128xf32>
    %168 = arith.mulf %167, %166 : vector<8x128xf32>
    %169 = arith.negf %168 : vector<8x128xf32>
    %170 = math.exp %169 : vector<8x128xf32>
    %cst_65 = arith.constant 1.000000e+00 : f32
    %171 = vector.broadcast %cst_65 : f32 to vector<8x128xf32>
    %172 = arith.addf %171, %170 : vector<8x128xf32>
    %173 = arith.divf %171, %172 : vector<8x128xf32>
    %174 = arith.mulf %166, %173 : vector<8x128xf32>
    %175 = arith.truncf %174 : vector<8x128xf32> to vector<8x128xbf16>
    %c0_66 = arith.constant 0 : index
    %c0_67 = arith.constant 0 : index
    %c0_68 = arith.constant 0 : index
    %176 = vector.load %arg16[%c0_66, %c0_67, %c0_68] : memref<2x128x32xbf16, #tpu.memory_space<vmem>>, vector<1x128x32xbf16>
    %177 = vector.shape_cast %176 : vector<1x128x32xbf16> to vector<128x32xbf16>
    %cst_69 = arith.constant dense<0.000000e+00> : vector<8x32xf32>
    %178 = tpu.matmul %175, %177, %cst_69 {dimension_numbers = #tpu.dot_dimension_numbers<[1], [0], [0], [1], [0, 0, 1, 1], [], []>} : vector<8x128xbf16>, vector<128x32xbf16>, vector<8x32xf32> -> vector<8x32xf32>
    %179 = arith.addf %132, %178 : vector<8x32xf32>
    %c0_70 = arith.constant 0 : index
    %c0_71 = arith.constant 0 : index
    %c0_72 = arith.constant 0 : index
    %180 = vector.load %arg17[%c0_70, %c0_71, %c0_72] : memref<2x1x32xf32, #tpu.memory_space<vmem>>, vector<1x1x32xf32>
    %181 = vector.shape_cast %180 : vector<1x1x32xf32> to vector<1x32xf32>
    %182 = vector.broadcast %181 : vector<1x32xf32> to vector<8x32xf32>
    %183 = arith.addf %179, %182 : vector<8x32xf32>
    %c1 = arith.constant 1 : index
    %c0_73 = arith.constant 0 : index
    %c0_74 = arith.constant 0 : index
    %184 = vector.load %arg6[%c1, %c0_73, %c0_74] : memref<2x1x32xf32, #tpu.memory_space<vmem>>, vector<1x1x32xf32>
    %185 = vector.shape_cast %184 : vector<1x1x32xf32> to vector<1x32xf32>
    %c1_75 = arith.constant 1 : index
    %c0_76 = arith.constant 0 : index
    %c0_77 = arith.constant 0 : index
    %186 = vector.load %arg7[%c1_75, %c0_76, %c0_77] : memref<2x1x32xf32, #tpu.memory_space<vmem>>, vector<1x1x32xf32>
    %187 = vector.shape_cast %186 : vector<1x1x32xf32> to vector<1x32xf32>
    %cst_78 = arith.constant dense<0.000000e+00> : vector<8xf32>
    %188 = vector.multi_reduction <add>, %183, %cst_78 [1] : vector<8x32xf32> to vector<8xf32>
    %189 = vector.shape_cast %188 : vector<8xf32> to vector<8x1xf32>
    %cst_79 = arith.constant 3.200000e+01 : f32
    %190 = vector.broadcast %cst_79 : f32 to vector<8x1xf32>
    %191 = arith.divf %189, %190 : vector<8x1xf32>
    %192 = vector.broadcast %191 : vector<8x1xf32> to vector<8x32xf32>
    %193 = arith.subf %183, %192 : vector<8x32xf32>
    %194 = arith.mulf %193, %193 : vector<8x32xf32>
    %cst_80 = arith.constant dense<0.000000e+00> : vector<8xf32>
    %195 = vector.multi_reduction <add>, %194, %cst_80 [1] : vector<8x32xf32> to vector<8xf32>
    %196 = vector.shape_cast %195 : vector<8xf32> to vector<8x1xf32>
    %cst_81 = arith.constant 3.200000e+01 : f32
    %197 = vector.broadcast %cst_81 : f32 to vector<8x1xf32>
    %198 = arith.divf %196, %197 : vector<8x1xf32>
    %199 = vector.broadcast %191 : vector<8x1xf32> to vector<8x32xf32>
    %200 = arith.subf %183, %199 : vector<8x32xf32>
    %cst_82 = arith.constant 9.99999974E-6 : f32
    %201 = vector.broadcast %cst_82 : f32 to vector<8x1xf32>
    %202 = arith.addf %198, %201 : vector<8x1xf32>
    %203 = math.rsqrt %202 : vector<8x1xf32>
    %204 = vector.broadcast %203 : vector<8x1xf32> to vector<8x32xf32>
    %205 = arith.mulf %200, %204 : vector<8x32xf32>
    %206 = vector.broadcast %185 : vector<1x32xf32> to vector<8x32xf32>
    %207 = arith.mulf %205, %206 : vector<8x32xf32>
    %208 = vector.broadcast %187 : vector<1x32xf32> to vector<8x32xf32>
    %209 = arith.addf %207, %208 : vector<8x32xf32>
    %210 = arith.truncf %209 : vector<8x32xf32> to vector<8x32xbf16>
    %c1_83 = arith.constant 1 : index
    %c0_84 = arith.constant 0 : index
    %c0_85 = arith.constant 0 : index
    %211 = vector.load %arg8[%c1_83, %c0_84, %c0_85] : memref<2x32x96xbf16, #tpu.memory_space<vmem>>, vector<1x32x96xbf16>
    %212 = vector.shape_cast %211 : vector<1x32x96xbf16> to vector<32x96xbf16>
    %cst_86 = arith.constant dense<0.000000e+00> : vector<8x96xf32>
    %213 = tpu.matmul %210, %212, %cst_86 {dimension_numbers = #tpu.dot_dimension_numbers<[1], [0], [0], [1], [0, 0, 1, 1], [], []>} : vector<8x32xbf16>, vector<32x96xbf16>, vector<8x96xf32> -> vector<8x96xf32>
    %c1_87 = arith.constant 1 : index
    %c0_88 = arith.constant 0 : index
    %c0_89 = arith.constant 0 : index
    %214 = vector.load %arg9[%c1_87, %c0_88, %c0_89] : memref<2x1x96xf32, #tpu.memory_space<vmem>>, vector<1x1x96xf32>
    %215 = vector.shape_cast %214 : vector<1x1x96xf32> to vector<1x96xf32>
    %216 = vector.broadcast %215 : vector<1x96xf32> to vector<8x96xf32>
    %217 = arith.addf %213, %216 : vector<8x96xf32>
    %218 = vector.extract_strided_slice %217 {offsets = [0, 0], sizes = [8, 8], strides = [1, 1]} : vector<8x96xf32> to vector<8x8xf32>
    %219 = vector.extract_strided_slice %217 {offsets = [0, 8], sizes = [8, 8], strides = [1, 1]} : vector<8x96xf32> to vector<8x8xf32>
    %220 = vector.extract_strided_slice %217 {offsets = [0, 16], sizes = [8, 8], strides = [1, 1]} : vector<8x96xf32> to vector<8x8xf32>
    %221 = vector.extract_strided_slice %217 {offsets = [0, 24], sizes = [8, 8], strides = [1, 1]} : vector<8x96xf32> to vector<8x8xf32>
    %222 = vector.shape_cast %218 : vector<8x8xf32> to vector<1x8x8xf32>
    %223 = vector.shape_cast %219 : vector<8x8xf32> to vector<1x8x8xf32>
    %224 = vector.shape_cast %220 : vector<8x8xf32> to vector<1x8x8xf32>
    %225 = vector.shape_cast %221 : vector<8x8xf32> to vector<1x8x8xf32>
    %226 = tpu.concatenate %222, %223, %224, %225 in 0 : vector<1x8x8xf32>, vector<1x8x8xf32>, vector<1x8x8xf32>, vector<1x8x8xf32> -> vector<4x8x8xf32>
    %227 = arith.truncf %226 : vector<4x8x8xf32> to vector<4x8x8xbf16>
    %228 = vector.extract_strided_slice %217 {offsets = [0, 32], sizes = [8, 8], strides = [1, 1]} : vector<8x96xf32> to vector<8x8xf32>
    %229 = vector.extract_strided_slice %217 {offsets = [0, 40], sizes = [8, 8], strides = [1, 1]} : vector<8x96xf32> to vector<8x8xf32>
    %230 = vector.extract_strided_slice %217 {offsets = [0, 48], sizes = [8, 8], strides = [1, 1]} : vector<8x96xf32> to vector<8x8xf32>
    %231 = vector.extract_strided_slice %217 {offsets = [0, 56], sizes = [8, 8], strides = [1, 1]} : vector<8x96xf32> to vector<8x8xf32>
    %232 = vector.shape_cast %228 : vector<8x8xf32> to vector<1x8x8xf32>
    %233 = vector.shape_cast %229 : vector<8x8xf32> to vector<1x8x8xf32>
    %234 = vector.shape_cast %230 : vector<8x8xf32> to vector<1x8x8xf32>
    %235 = vector.shape_cast %231 : vector<8x8xf32> to vector<1x8x8xf32>
    %236 = tpu.concatenate %232, %233, %234, %235 in 0 : vector<1x8x8xf32>, vector<1x8x8xf32>, vector<1x8x8xf32>, vector<1x8x8xf32> -> vector<4x8x8xf32>
    %237 = arith.truncf %236 : vector<4x8x8xf32> to vector<4x8x8xbf16>
    %238 = vector.extract_strided_slice %217 {offsets = [0, 64], sizes = [8, 8], strides = [1, 1]} : vector<8x96xf32> to vector<8x8xf32>
    %239 = vector.extract_strided_slice %217 {offsets = [0, 72], sizes = [8, 8], strides = [1, 1]} : vector<8x96xf32> to vector<8x8xf32>
    %240 = vector.extract_strided_slice %217 {offsets = [0, 80], sizes = [8, 8], strides = [1, 1]} : vector<8x96xf32> to vector<8x8xf32>
    %241 = vector.extract_strided_slice %217 {offsets = [0, 88], sizes = [8, 8], strides = [1, 1]} : vector<8x96xf32> to vector<8x8xf32>
    %242 = vector.shape_cast %238 : vector<8x8xf32> to vector<1x8x8xf32>
    %243 = vector.shape_cast %239 : vector<8x8xf32> to vector<1x8x8xf32>
    %244 = vector.shape_cast %240 : vector<8x8xf32> to vector<1x8x8xf32>
    %245 = vector.shape_cast %241 : vector<8x8xf32> to vector<1x8x8xf32>
    %246 = tpu.concatenate %242, %243, %244, %245 in 0 : vector<1x8x8xf32>, vector<1x8x8xf32>, vector<1x8x8xf32>, vector<1x8x8xf32> -> vector<4x8x8xf32>
    %247 = arith.truncf %246 : vector<4x8x8xf32> to vector<4x8x8xbf16>
    %cst_90 = arith.constant dense<0.000000e+00> : vector<4x8x8xf32>
    %248 = tpu.matmul %227, %237, %cst_90 {dimension_numbers = #tpu.dot_dimension_numbers<[2], [2], [1], [1], [0, 0, 0, 1, 1, 1], [0], [0]>} : vector<4x8x8xbf16>, vector<4x8x8xbf16>, vector<4x8x8xf32> -> vector<4x8x8xf32>
    %249 = vector.broadcast %5 : vector<1x1x8xf32> to vector<4x8x8xf32>
    %250 = arith.addf %248, %249 : vector<4x8x8xf32>
    %cst_91 = arith.constant dense<0xFF800000> : vector<4x8xf32>
    %251 = vector.multi_reduction <maximumf>, %250, %cst_91 [2] : vector<4x8x8xf32> to vector<4x8xf32>
    %252 = vector.shape_cast %251 : vector<4x8xf32> to vector<4x8x1xf32>
    %253 = vector.broadcast %252 : vector<4x8x1xf32> to vector<4x8x8xf32>
    %254 = arith.subf %250, %253 : vector<4x8x8xf32>
    %255 = math.exp %254 : vector<4x8x8xf32>
    %cst_92 = arith.constant dense<0.000000e+00> : vector<4x8xf32>
    %256 = vector.multi_reduction <add>, %255, %cst_92 [2] : vector<4x8x8xf32> to vector<4x8xf32>
    %257 = vector.shape_cast %256 : vector<4x8xf32> to vector<4x8x1xf32>
    %258 = tpu.reciprocal %257 {approx = true} : vector<4x8x1xf32> -> vector<4x8x1xf32>
    %259 = vector.broadcast %258 : vector<4x8x1xf32> to vector<4x8x8xf32>
    %260 = arith.mulf %255, %259 : vector<4x8x8xf32>
    %261 = arith.truncf %260 : vector<4x8x8xf32> to vector<4x8x8xbf16>
    %cst_93 = arith.constant dense<0.000000e+00> : vector<4x8x8xf32>
    %262 = tpu.matmul %261, %247, %cst_93 {dimension_numbers = #tpu.dot_dimension_numbers<[2], [1], [1], [2], [0, 0, 0, 1, 1, 2], [0], [0]>} : vector<4x8x8xbf16>, vector<4x8x8xbf16>, vector<4x8x8xf32> -> vector<4x8x8xf32>
    %263 = vector.extract_strided_slice %262 {offsets = [0, 0, 0], sizes = [1, 8, 8], strides = [1, 1, 1]} : vector<4x8x8xf32> to vector<1x8x8xf32>
    %264 = vector.shape_cast %263 : vector<1x8x8xf32> to vector<8x8xf32>
    %265 = vector.extract_strided_slice %262 {offsets = [1, 0, 0], sizes = [1, 8, 8], strides = [1, 1, 1]} : vector<4x8x8xf32> to vector<1x8x8xf32>
    %266 = vector.shape_cast %265 : vector<1x8x8xf32> to vector<8x8xf32>
    %267 = vector.extract_strided_slice %262 {offsets = [2, 0, 0], sizes = [1, 8, 8], strides = [1, 1, 1]} : vector<4x8x8xf32> to vector<1x8x8xf32>
    %268 = vector.shape_cast %267 : vector<1x8x8xf32> to vector<8x8xf32>
    %269 = vector.extract_strided_slice %262 {offsets = [3, 0, 0], sizes = [1, 8, 8], strides = [1, 1, 1]} : vector<4x8x8xf32> to vector<1x8x8xf32>
    %270 = vector.shape_cast %269 : vector<1x8x8xf32> to vector<8x8xf32>
    %271 = tpu.concatenate %264, %266, %268, %270 in 1 : vector<8x8xf32>, vector<8x8xf32>, vector<8x8xf32>, vector<8x8xf32> -> vector<8x32xf32>
    %272 = arith.truncf %271 : vector<8x32xf32> to vector<8x32xbf16>
    %c1_94 = arith.constant 1 : index
    %c0_95 = arith.constant 0 : index
    %c0_96 = arith.constant 0 : index
    %273 = vector.load %arg10[%c1_94, %c0_95, %c0_96] : memref<2x32x32xbf16, #tpu.memory_space<vmem>>, vector<1x32x32xbf16>
    %274 = vector.shape_cast %273 : vector<1x32x32xbf16> to vector<32x32xbf16>
    %cst_97 = arith.constant dense<0.000000e+00> : vector<8x32xf32>
    %275 = tpu.matmul %272, %274, %cst_97 {dimension_numbers = #tpu.dot_dimension_numbers<[1], [0], [0], [1], [0, 0, 1, 1], [], []>} : vector<8x32xbf16>, vector<32x32xbf16>, vector<8x32xf32> -> vector<8x32xf32>
    %c1_98 = arith.constant 1 : index
    %c0_99 = arith.constant 0 : index
    %c0_100 = arith.constant 0 : index
    %276 = vector.load %arg11[%c1_98, %c0_99, %c0_100] : memref<2x1x32xf32, #tpu.memory_space<vmem>>, vector<1x1x32xf32>
    %277 = vector.shape_cast %276 : vector<1x1x32xf32> to vector<1x32xf32>
    %278 = vector.broadcast %277 : vector<1x32xf32> to vector<8x32xf32>
    %279 = arith.addf %275, %278 : vector<8x32xf32>
    %280 = arith.addf %183, %279 : vector<8x32xf32>
    %c1_101 = arith.constant 1 : index
    %c0_102 = arith.constant 0 : index
    %c0_103 = arith.constant 0 : index
    %281 = vector.load %arg12[%c1_101, %c0_102, %c0_103] : memref<2x1x32xf32, #tpu.memory_space<vmem>>, vector<1x1x32xf32>
    %282 = vector.shape_cast %281 : vector<1x1x32xf32> to vector<1x32xf32>
    %c1_104 = arith.constant 1 : index
    %c0_105 = arith.constant 0 : index
    %c0_106 = arith.constant 0 : index
    %283 = vector.load %arg13[%c1_104, %c0_105, %c0_106] : memref<2x1x32xf32, #tpu.memory_space<vmem>>, vector<1x1x32xf32>
    %284 = vector.shape_cast %283 : vector<1x1x32xf32> to vector<1x32xf32>
    %cst_107 = arith.constant dense<0.000000e+00> : vector<8xf32>
    %285 = vector.multi_reduction <add>, %280, %cst_107 [1] : vector<8x32xf32> to vector<8xf32>
    %286 = vector.shape_cast %285 : vector<8xf32> to vector<8x1xf32>
    %cst_108 = arith.constant 3.200000e+01 : f32
    %287 = vector.broadcast %cst_108 : f32 to vector<8x1xf32>
    %288 = arith.divf %286, %287 : vector<8x1xf32>
    %289 = vector.broadcast %288 : vector<8x1xf32> to vector<8x32xf32>
    %290 = arith.subf %280, %289 : vector<8x32xf32>
    %291 = arith.mulf %290, %290 : vector<8x32xf32>
    %cst_109 = arith.constant dense<0.000000e+00> : vector<8xf32>
    %292 = vector.multi_reduction <add>, %291, %cst_109 [1] : vector<8x32xf32> to vector<8xf32>
    %293 = vector.shape_cast %292 : vector<8xf32> to vector<8x1xf32>
    %cst_110 = arith.constant 3.200000e+01 : f32
    %294 = vector.broadcast %cst_110 : f32 to vector<8x1xf32>
    %295 = arith.divf %293, %294 : vector<8x1xf32>
    %296 = vector.broadcast %288 : vector<8x1xf32> to vector<8x32xf32>
    %297 = arith.subf %280, %296 : vector<8x32xf32>
    %cst_111 = arith.constant 9.99999974E-6 : f32
    %298 = vector.broadcast %cst_111 : f32 to vector<8x1xf32>
    %299 = arith.addf %295, %298 : vector<8x1xf32>
    %300 = math.rsqrt %299 : vector<8x1xf32>
    %301 = vector.broadcast %300 : vector<8x1xf32> to vector<8x32xf32>
    %302 = arith.mulf %297, %301 : vector<8x32xf32>
    %303 = vector.broadcast %282 : vector<1x32xf32> to vector<8x32xf32>
    %304 = arith.mulf %302, %303 : vector<8x32xf32>
    %305 = vector.broadcast %284 : vector<1x32xf32> to vector<8x32xf32>
    %306 = arith.addf %304, %305 : vector<8x32xf32>
    %307 = arith.truncf %306 : vector<8x32xf32> to vector<8x32xbf16>
    %c1_112 = arith.constant 1 : index
    %c0_113 = arith.constant 0 : index
    %c0_114 = arith.constant 0 : index
    %308 = vector.load %arg14[%c1_112, %c0_113, %c0_114] : memref<2x32x128xbf16, #tpu.memory_space<vmem>>, vector<1x32x128xbf16>
    %309 = vector.shape_cast %308 : vector<1x32x128xbf16> to vector<32x128xbf16>
    %cst_115 = arith.constant dense<0.000000e+00> : vector<8x128xf32>
    %310 = tpu.matmul %307, %309, %cst_115 {dimension_numbers = #tpu.dot_dimension_numbers<[1], [0], [0], [1], [0, 0, 1, 1], [], []>} : vector<8x32xbf16>, vector<32x128xbf16>, vector<8x128xf32> -> vector<8x128xf32>
    %c1_116 = arith.constant 1 : index
    %c0_117 = arith.constant 0 : index
    %c0_118 = arith.constant 0 : index
    %311 = vector.load %arg15[%c1_116, %c0_117, %c0_118] : memref<2x1x128xf32, #tpu.memory_space<vmem>>, vector<1x1x128xf32>
    %312 = vector.shape_cast %311 : vector<1x1x128xf32> to vector<1x128xf32>
    %313 = vector.broadcast %312 : vector<1x128xf32> to vector<8x128xf32>
    %314 = arith.addf %310, %313 : vector<8x128xf32>
    %cst_119 = arith.constant 1.702000e+00 : f32
    %315 = vector.broadcast %cst_119 : f32 to vector<8x128xf32>
    %316 = arith.mulf %315, %314 : vector<8x128xf32>
    %317 = arith.negf %316 : vector<8x128xf32>
    %318 = math.exp %317 : vector<8x128xf32>
    %cst_120 = arith.constant 1.000000e+00 : f32
    %319 = vector.broadcast %cst_120 : f32 to vector<8x128xf32>
    %320 = arith.addf %319, %318 : vector<8x128xf32>
    %321 = arith.divf %319, %320 : vector<8x128xf32>
    %322 = arith.mulf %314, %321 : vector<8x128xf32>
    %323 = arith.truncf %322 : vector<8x128xf32> to vector<8x128xbf16>
    %c1_121 = arith.constant 1 : index
    %c0_122 = arith.constant 0 : index
    %c0_123 = arith.constant 0 : index
    %324 = vector.load %arg16[%c1_121, %c0_122, %c0_123] : memref<2x128x32xbf16, #tpu.memory_space<vmem>>, vector<1x128x32xbf16>
    %325 = vector.shape_cast %324 : vector<1x128x32xbf16> to vector<128x32xbf16>
    %cst_124 = arith.constant dense<0.000000e+00> : vector<8x32xf32>
    %326 = tpu.matmul %323, %325, %cst_124 {dimension_numbers = #tpu.dot_dimension_numbers<[1], [0], [0], [1], [0, 0, 1, 1], [], []>} : vector<8x128xbf16>, vector<128x32xbf16>, vector<8x32xf32> -> vector<8x32xf32>
    %327 = arith.addf %280, %326 : vector<8x32xf32>
    %c1_125 = arith.constant 1 : index
    %c0_126 = arith.constant 0 : index
    %c0_127 = arith.constant 0 : index
    %328 = vector.load %arg17[%c1_125, %c0_126, %c0_127] : memref<2x1x32xf32, #tpu.memory_space<vmem>>, vector<1x1x32xf32>
    %329 = vector.shape_cast %328 : vector<1x1x32xf32> to vector<1x32xf32>
    %330 = vector.broadcast %329 : vector<1x32xf32> to vector<8x32xf32>
    %331 = arith.addf %327, %330 : vector<8x32xf32>
    %332 = vector.extract_strided_slice %331 {offsets = [0, 0], sizes = [1, 32], strides = [1, 1]} : vector<8x32xf32> to vector<1x32xf32>
    %c0_128 = arith.constant 0 : index
    %c0_129 = arith.constant 0 : index
    %333 = vector.load %arg18[%c0_128, %c0_129] : memref<1x32xf32, #tpu.memory_space<vmem>>, vector<1x32xf32>
    %c0_130 = arith.constant 0 : index
    %c0_131 = arith.constant 0 : index
    %334 = vector.load %arg19[%c0_130, %c0_131] : memref<1x32xf32, #tpu.memory_space<vmem>>, vector<1x32xf32>
    %cst_132 = arith.constant dense<0.000000e+00> : vector<1xf32>
    %335 = vector.multi_reduction <add>, %332, %cst_132 [1] : vector<1x32xf32> to vector<1xf32>
    %336 = vector.shape_cast %335 : vector<1xf32> to vector<1x1xf32>
    %cst_133 = arith.constant 3.200000e+01 : f32
    %337 = vector.broadcast %cst_133 : f32 to vector<1x1xf32>
    %338 = arith.divf %336, %337 : vector<1x1xf32>
    %339 = vector.broadcast %338 : vector<1x1xf32> to vector<1x32xf32>
    %340 = arith.subf %332, %339 : vector<1x32xf32>
    %341 = arith.mulf %340, %340 : vector<1x32xf32>
    %cst_134 = arith.constant dense<0.000000e+00> : vector<1xf32>
    %342 = vector.multi_reduction <add>, %341, %cst_134 [1] : vector<1x32xf32> to vector<1xf32>
    %343 = vector.shape_cast %342 : vector<1xf32> to vector<1x1xf32>
    %cst_135 = arith.constant 3.200000e+01 : f32
    %344 = vector.broadcast %cst_135 : f32 to vector<1x1xf32>
    %345 = arith.divf %343, %344 : vector<1x1xf32>
    %346 = vector.broadcast %338 : vector<1x1xf32> to vector<1x32xf32>
    %347 = arith.subf %332, %346 : vector<1x32xf32>
    %cst_136 = arith.constant 9.99999974E-6 : f32
    %348 = vector.broadcast %cst_136 : f32 to vector<1x1xf32>
    %349 = arith.addf %345, %348 : vector<1x1xf32>
    %350 = math.rsqrt %349 : vector<1x1xf32>
    %351 = vector.broadcast %350 : vector<1x1xf32> to vector<1x32xf32>
    %352 = arith.mulf %347, %351 : vector<1x32xf32>
    %353 = arith.mulf %352, %333 : vector<1x32xf32>
    %354 = arith.addf %353, %334 : vector<1x32xf32>
    %355 = arith.truncf %354 : vector<1x32xf32> to vector<1x32xbf16>
    %c0_137 = arith.constant 0 : index
    %c0_138 = arith.constant 0 : index
    %356 = vector.load %arg20[%c0_137, %c0_138] : memref<32x128xbf16, #tpu.memory_space<vmem>>, vector<32x128xbf16>
    %cst_139 = arith.constant dense<0.000000e+00> : vector<1x128xf32>
    %357 = tpu.matmul %355, %356, %cst_139 {dimension_numbers = #tpu.dot_dimension_numbers<[1], [0], [0], [1], [0, 0, 1, 1], [], []>} : vector<1x32xbf16>, vector<32x128xbf16>, vector<1x128xf32> -> vector<1x128xf32>
    %c0_140 = arith.constant 0 : index
    %c0_141 = arith.constant 0 : index
    %c0_142 = arith.constant 0 : index
    %358 = vector.load %arg21[%c0_140, %c0_141, %c0_142] : memref<1x1x128xf32, #tpu.memory_space<vmem>>, vector<1x1x128xf32>
    %359 = vector.shape_cast %358 : vector<1x1x128xf32> to vector<1x128xf32>
    %360 = vector.shape_cast %357 : vector<1x128xf32> to vector<1x1x128xf32>
    tpu.vector_store %arg21[%c0_140, %c0_141, %c0_142], %360 {strides = array<i32>} : memref<1x1x128xf32, #tpu.memory_space<vmem>>, vector<1x1x128xf32>,
    return
  }
  func.func @transform_0(%arg0: i32) -> (i32, i32, i32) {
    %c0_i32 = arith.constant 0 : i32
    %c0_i32_0 = arith.constant 0 : i32
    %c0_i32_1 = arith.constant 0 : i32
    return %arg0, %c0_i32, %c0_i32_0 : i32, i32, i32
  }
  func.func @transform_1(%arg0: i32) -> (i32, i32) {
    %c0_i32 = arith.constant 0 : i32
    %c0_i32_0 = arith.constant 0 : i32
    %c0_i32_1 = arith.constant 0 : i32
    return %c0_i32, %c0_i32_0 : i32, i32
  }
  func.func @transform_2(%arg0: i32) -> (i32, i32) {
    %c0_i32 = arith.constant 0 : i32
    %c0_i32_0 = arith.constant 0 : i32
    %c0_i32_1 = arith.constant 0 : i32
    return %c0_i32, %c0_i32_0 : i32, i32
  }
  func.func @transform_3(%arg0: i32) -> (i32, i32) {
    %c0_i32 = arith.constant 0 : i32
    %c0_i32_0 = arith.constant 0 : i32
    %c0_i32_1 = arith.constant 0 : i32
    return %c0_i32, %c0_i32_0 : i32, i32
  }
  func.func @transform_4(%arg0: i32) -> (i32, i32) {
    %c0_i32 = arith.constant 0 : i32
    %c0_i32_0 = arith.constant 0 : i32
    %c0_i32_1 = arith.constant 0 : i32
    return %c0_i32, %c0_i32_0 : i32, i32
  }
  func.func @transform_5(%arg0: i32) -> (i32, i32, i32) {
    %c0_i32 = arith.constant 0 : i32
    %c0_i32_0 = arith.constant 0 : i32
    %c0_i32_1 = arith.constant 0 : i32
    %c0_i32_2 = arith.constant 0 : i32
    return %c0_i32, %c0_i32_0, %c0_i32_1 : i32, i32, i32
  }
  func.func @transform_6(%arg0: i32) -> (i32, i32, i32) {
    %c0_i32 = arith.constant 0 : i32
    %c0_i32_0 = arith.constant 0 : i32
    %c0_i32_1 = arith.constant 0 : i32
    %c0_i32_2 = arith.constant 0 : i32
    return %c0_i32, %c0_i32_0, %c0_i32_1 : i32, i32, i32
  }
  func.func @transform_7(%arg0: i32) -> (i32, i32, i32) {
    %c0_i32 = arith.constant 0 : i32
    %c0_i32_0 = arith.constant 0 : i32
    %c0_i32_1 = arith.constant 0 : i32
    %c0_i32_2 = arith.constant 0 : i32
    return %c0_i32, %c0_i32_0, %c0_i32_1 : i32, i32, i32
  }
  func.func @transform_8(%arg0: i32) -> (i32, i32, i32) {
    %c0_i32 = arith.constant 0 : i32
    %c0_i32_0 = arith.constant 0 : i32
    %c0_i32_1 = arith.constant 0 : i32
    %c0_i32_2 = arith.constant 0 : i32
    return %c0_i32, %c0_i32_0, %c0_i32_1 : i32, i32, i32
  }
  func.func @transform_9(%arg0: i32) -> (i32, i32, i32) {
    %c0_i32 = arith.constant 0 : i32
    %c0_i32_0 = arith.constant 0 : i32
    %c0_i32_1 = arith.constant 0 : i32
    %c0_i32_2 = arith.constant 0 : i32
    return %c0_i32, %c0_i32_0, %c0_i32_1 : i32, i32, i32
  }
  func.func @transform_10(%arg0: i32) -> (i32, i32, i32) {
    %c0_i32 = arith.constant 0 : i32
    %c0_i32_0 = arith.constant 0 : i32
    %c0_i32_1 = arith.constant 0 : i32
    %c0_i32_2 = arith.constant 0 : i32
    return %c0_i32, %c0_i32_0, %c0_i32_1 : i32, i32, i32
  }
  func.func @transform_11(%arg0: i32) -> (i32, i32, i32) {
    %c0_i32 = arith.constant 0 : i32
    %c0_i32_0 = arith.constant 0 : i32
    %c0_i32_1 = arith.constant 0 : i32
    %c0_i32_2 = arith.constant 0 : i32
    return %c0_i32, %c0_i32_0, %c0_i32_1 : i32, i32, i32
  }
  func.func @transform_12(%arg0: i32) -> (i32, i32, i32) {
    %c0_i32 = arith.constant 0 : i32
    %c0_i32_0 = arith.constant 0 : i32
    %c0_i32_1 = arith.constant 0 : i32
    %c0_i32_2 = arith.constant 0 : i32
    return %c0_i32, %c0_i32_0, %c0_i32_1 : i32, i32, i32
  }
  func.func @transform_13(%arg0: i32) -> (i32, i32, i32) {
    %c0_i32 = arith.constant 0 : i32
    %c0_i32_0 = arith.constant 0 : i32
    %c0_i32_1 = arith.constant 0 : i32
    %c0_i32_2 = arith.constant 0 : i32
    return %c0_i32, %c0_i32_0, %c0_i32_1 : i32, i32, i32
  }
  func.func @transform_14(%arg0: i32) -> (i32, i32, i32) {
    %c0_i32 = arith.constant 0 : i32
    %c0_i32_0 = arith.constant 0 : i32
    %c0_i32_1 = arith.constant 0 : i32
    %c0_i32_2 = arith.constant 0 : i32
    return %c0_i32, %c0_i32_0, %c0_i32_1 : i32, i32, i32
  }
  func.func @transform_15(%arg0: i32) -> (i32, i32, i32) {
    %c0_i32 = arith.constant 0 : i32
    %c0_i32_0 = arith.constant 0 : i32
    %c0_i32_1 = arith.constant 0 : i32
    %c0_i32_2 = arith.constant 0 : i32
    return %c0_i32, %c0_i32_0, %c0_i32_1 : i32, i32, i32
  }
  func.func @transform_16(%arg0: i32) -> (i32, i32, i32) {
    %c0_i32 = arith.constant 0 : i32
    %c0_i32_0 = arith.constant 0 : i32
    %c0_i32_1 = arith.constant 0 : i32
    %c0_i32_2 = arith.constant 0 : i32
    return %c0_i32, %c0_i32_0, %c0_i32_1 : i32, i32, i32
  }
  func.func @transform_17(%arg0: i32) -> (i32, i32) {
    %c0_i32 = arith.constant 0 : i32
    %c0_i32_0 = arith.constant 0 : i32
    %c0_i32_1 = arith.constant 0 : i32
    return %c0_i32, %c0_i32_0 : i32, i32
  }
  func.func @transform_18(%arg0: i32) -> (i32, i32) {
    %c0_i32 = arith.constant 0 : i32
    %c0_i32_0 = arith.constant 0 : i32
    %c0_i32_1 = arith.constant 0 : i32
    return %c0_i32, %c0_i32_0 : i32, i32
  }
  func.func @transform_19(%arg0: i32) -> (i32, i32) {
    %c0_i32 = arith.constant 0 : i32
    %c0_i32_0 = arith.constant 0 : i32
    %c0_i32_1 = arith.constant 0 : i32
    return %c0_i32, %c0_i32_0 : i32, i32
  }
  func.func @transform_20(%arg0: i32) -> (i32, i32, i32) {
    %c0_i32 = arith.constant 0 : i32
    %c0_i32_0 = arith.constant 0 : i32
    %c0_i32_1 = arith.constant 0 : i32
    return %arg0, %c0_i32, %c0_i32_0 : i32, i32, i32
  }
}

</mosaic_0001>

<bundles_post_ra>
// kernel: clip_encode_image.1
= control target key start
LH: loop header
LB: loop body
LE: loop exit
PB: predicated region body
PF: predicated region fallthrough
CT: control target
= control target key end

     0   :  { %s3938_s0 = inlined_call_operand.vmem [shape: bf16[2,8,192], index: 0, kind: input, shape index: {}]   ;;  %s3939_s1 = inlined_call_operand.vmem [shape: f32[8,32], index: 1, kind: input, shape index: {}]   ;;  %s3940_s2 = inlined_call_operand.vmem [shape: bf16[192,32], index: 2, kind: input, shape index: {}]   ;;  %s3941_s3 = inlined_call_operand.vmem [shape: f32[1,32], index: 3, kind: input, shape index: {}]   ;;  %s3942_s4 = inlined_call_operand.vmem [shape: f32[1,32], index: 4, kind: input, shape index: {}]   ;;  %s3943_s5 = inlined_call_operand.vmem [shape: f32[2,1,32], index: 5, kind: input, shape index: {}]   ;;  %s3944_s6 = inlined_call_operand.vmem [shape: f32[2,1,32], index: 6, kind: input, shape index: {}]   ;;  %s3945_s7 = inlined_call_operand.vmem [shape: bf16[2,32,96], index: 7, kind: input, shape index: {}]   ;;  %s3946_s8 = inlined_call_operand.vmem [shape: f32[2,1,96], index: 8, kind: input, shape index: {}]   ;;  %s3947_s9 = inlined_call_operand.vmem [shape: bf16[2,32,32], index: 9, kind: input, shape index: {}]   ;;  %s3948_s10 = inlined_call_operand.vmem [shape: f32[2,1,32], index: 10, kind: input, shape index: {}]   ;;  %s3949_s11 = inlined_call_operand.vmem [shape: f32[2,1,32], index: 11, kind: input, shape index: {}]   ;;  %s3950_s12 = inlined_call_operand.vmem [shape: f32[2,1,32], index: 12, kind: input, shape index: {}]   ;;  %s3951_s13 = inlined_call_operand.vmem [shape: bf16[2,32,128], index: 13, kind: input, shape index: {}]   ;;  %s3952_s14 = inlined_call_operand.vmem [shape: f32[2,1,128], index: 14, kind: input, shape index: {}]   ;;  %s3953_s15 = inlined_call_operand.vmem [shape: bf16[2,128,32], index: 15, kind: input, shape index: {}]   ;;  %s3954_s16 = inlined_call_operand.vmem [shape: f32[2,1,32], index: 16, kind: input, shape index: {}]   ;;  %s3955_s17 = inlined_call_operand.vmem [shape: f32[1,32], index: 17, kind: input, shape index: {}]   ;;  %s3956_s18 = inlined_call_operand.vmem [shape: f32[1,32], index: 18, kind: input, shape index: {}]   ;;  %s3957_s19 = inlined_call_operand.vmem [shape: bf16[32,128], index: 19, kind: input, shape index: {}]   ;;  %s3958_s20 = inlined_call_operand.hbm [shape: f32[2,1,128], index: 20, kind: output, shape index: {}]  }
   0x1   :  { %3970 = sst [smem:[#allocation11_spill]] %s3938_s0 }
   0x2   :  { %3971 = sst [smem:[#allocation12_spill]] %s3939_s1 }
   0x3   :  { %3972 = sst [smem:[#allocation13_spill]] %s3940_s2 }
   0x4   :  { %3973 = sst [smem:[#allocation14_spill]] %s3941_s3 }
   0x5   :  { %3974 = sst [smem:[#allocation15_spill]] %s3942_s4 }
   0x6   :  { %3975 = sst [smem:[#allocation16_spill]] %s3943_s5 }
   0x7   :  { %3976 = sst [smem:[#allocation17_spill]] %s3958_s20 }
   0x8   :  { %25 = vsyncpa [#allocation3], 0 }
   0x9   :  { %27 = vsyncpa [#allocation3 + $0x1], 0  ;;  %s3394_s1 = smov 0   ;;  %s3396_s22 = smov 0  }
   0xa   :  { %s3398_s23 = smov 0   ;;  %s3400_s24 = smov 0  }
   0xb LB: > { %3977 = sst [smem:[#allocation5_spill]] %s3262_s1  ;;  %s3415_s2 = sadd.s32 4294967295, %s3274_s24   ;;  %s3274_s24 = sphi %s3400_s24, %s3999_s24   ;;  %s3270_s23 = sphi %s3398_s23, %s4001_s23   ;;  %s3266_s22 = sphi %s3396_s22, %s4003_s22   ;;  %s3262_s1 = sphi %s3394_s1, %s4002_s1  }
   0xc   : > { %3978 = sst [smem:[#allocation6_spill]] %s3270_s23  ;;  %s2668_s25 = sadd.s32 4294967294, %s3274_s24  }
   0xd   : > { %3979 = sst [smem:[#allocation7_spill]] %s3274_s24  ;;  %s3419_s3 = sadd.s32 1, %s3274_s24  }
   0xe   : > { %3980 = sst [smem:[#allocation8_spill]] %s3419_s3  ;;  %s465_s26 = sadd.s32 1, %s3270_s23 }
   0xf   : > { %s462_s27 = ssub.s32 %s3274_s24, %s3419_s3  ;;  %p475_p0 = scmp.ne.s32.totalorder %s3270_s23, %s3266_s22 }
  0x10   : > { %p463_p1 = scmp.eq.s32.totalorder %s462_s27, 0  ;;  %p476_p2 = scmp.eq.s32.totalorder %s3415_s2, 1 }
  0x11   : > { %p481_p3 = scmp.ne.s32.totalorder %s3266_s22, %s3262_s1  ;;  %p482_p4 = scmp.eq.s32.totalorder %s2668_s25, 1 }
  0x12   : > { %s3430_s28 = scalar_select %p463_p1, %s3270_s23, %s465_s26  }
  0x13   : > { %p3432_p5 = por %p476_p2, %p475_p0  ;;  %p3436_p6 = por %p482_p4, %p481_p3 }
  0x14   : > { %3981 = sst [smem:[#allocation9_spill]] %s3430_s28  ;;  %p2671_p7 = scmp.ge.s32.totalorder %s3274_s24, 1 }
  0x15   : > { %s3983_s29 = scalar_select %p3436_p6, 1, 0 }
  0x16   : > { %p565_p8 = scmp.lt.s32.totalorder %s3274_s24, 3 }
  0x17   : > { %3984 = sst [smem:[#allocation10_spill]] %s3983_s29 }
  0x18   : > { %p566_p9 = pnand %p2671_p7, %p565_p8 }
  0x19   : > { %s3985_s21 = sld [smem:[#allocation13_spill]] (!%p566_p9)  ;;  %v3276_v1 = vmov (!%p566_p9), 0   ;;  %p622_p10 = scmp.lt.s32.totalorder (!%p566_p9), %s3415_s2, 1  ;;  %vm736_vm0 = vcmask (!%p566_p9), 523264   ;;  %vm782_vm1 = vcmask (!%p566_p9), 261120   ;;  %v3130_v43 = vld [vmem:[%s3945_s7] sm:$0xff] (!%p566_p9)  }
  0x1a   : > { %569 = sbr.rel (%p566_p9) target bundleno = 6423 (0x1917), region = 100  ;;  %740 = vmatprep.subr.bf16.mxu0 (!%p566_p9), %v3276_v1  ;;  %s3986_s29 = sld [smem:[#allocation11_spill]] (!%p566_p9)  ;;  %v3277_v44 = vmov (!%p566_p9), 0.0   ;;  %vm3278_vm2 = vmmov (!%p566_p9), 0   ;;  %v3131_v45 = vld [vmem:[%s3945_s7 + $0x8] sm:$0xff] (!%p566_p9)   ;;  %vm924_vm3 = vcmask (!%p566_p9), 64512  }
  0x1b   : > { %s3987_s24 = sld [smem:[#allocation12_spill]] (!%p566_p9)  ;;  %s3989_s25 = sld [smem:[#allocation15_spill]] (!%p566_p9)  ;;  %2873 = vmatprep.subr.bf16.mxu1 (!%p566_p9), %v3277_v44  ;;  %2877 = vmatprep.mubr.msk.bf16.mxu1 (!%p566_p9), %vm3278_vm2, %v3277_v44  ;;  %v2692_v52 = vld [vmem:[%s3944_s6] ss:$0 sm:$0xff] (!%p566_p9)  ;;  %vm1171_vm5 = vcmask (!%p566_p9), 1043456   ;;  %vm1372_vm6 = vcmask (!%p566_p9), 130048  }
  0x1c   : > { %2874 = vmatpush3.bf16.msra.mxu1 (!%p566_p9), %v3130_v43  ;;  %s3990_s5 = sld [smem:[#allocation16_spill]] (!%p566_p9)  ;;  %v2693_v56 = vld [vmem:[%s3946_s8] ss:$0 sm:$0xff] (!%p566_p9)  ;;  %s3279_s0 = smov (!%p566_p9), 112   ;;  %vm1374_vm7 = vcmask (!%p566_p9), 195584   ;;  %vm2523_vm8 = vcmask (!%p566_p9), 253952  }
  0x1d   : > { %2875 = vmatprep.subr.bf16.mxu1 (!%p566_p9), %v3277_v44  ;;  %s3281_s26 = smov (!%p566_p9), 104   ;;  %s3282_s23 = smov (!%p566_p9), 96  }
  0x1e   : > { %s3284_s28 = smov (!%p566_p9), 64   ;;  %s3968_s30 = smov (!%p566_p9), 16  }
  0x1f   : > { %v3116_v0 = vld [vmem:[%s3985_s21] sm:$0xff] (!%p566_p9)   ;;  %v3117_v2 = vld [vmem:[%s3985_s21 + $0x8] sm:$0xff] (!%p566_p9)   ;;  %v3118_v3 = vld [vmem:[%s3985_s21 + $0x10] sm:$0xff] (!%p566_p9)  }
  0x20   : > { %741 = vmatpush1.bf16.msra.mxu0 (!%p566_p9), %v3116_v0  ;;  %v3119_v4 = vld [vmem:[%s3985_s21 + $0x18] sm:$0xff] (!%p566_p9)   ;;  %v3120_v5 = vld [vmem:[%s3985_s21 + $0x20] sm:$0xff] (!%p566_p9)   ;;  %v3121_v8 = vld [vmem:[%s3985_s21 + $0x28] sm:$0xff] (!%p566_p9)   ;;  %2876 = vmatpush3.bf16.msra.mxu1 (!%p566_p9), %v3131_v45 }
  0x21   : > { %742 = vmatprep.subr.bf16.mxu0 %v3276_v1  ;;  %s623_s27 = scalar_select %p622_p10, %s3415_s2, 1  ;;  %v3122_v9 = vld [vmem:[%s3985_s21 + $0x30] sm:$0xff]   ;;  %v3123_v10 = vld [vmem:[%s3985_s21 + $0x38] sm:$0xff]   ;;  %v3124_v11 = vld [vmem:[%s3985_s21 + $0x40] sm:$0xff]   ;;  %2881 = vmatprep.subr.bf16.mxu1 %v3277_v44 }
  0x22   : > { %v3125_v12 = vld [vmem:[%s3985_s21 + $0x48] sm:$0xff]   ;;  %v3126_v13 = vld [vmem:[%s3985_s21 + $0x50] sm:$0xff]   ;;  %v3127_v14 = vld [vmem:[%s3985_s21 + $0x58] sm:$0xff]  }
  0x23   : > { %s2801_s3 = sshll.u32 %s623_s27, 3  ;;  %v657_v16 = vld [vmem:[%s3987_s24] sm:$0xff]  ;;  %s3988_s27 = sld [smem:[#allocation14_spill]] }
  0x24   : > { %743 = vmatpush1.bf16.msra.mxu0 %v3117_v2  ;;  %s626_s1 = scalar_lea.vmem %s3986_s29, %s2801_s3  ;;  %v2690_v34 = vld [vmem:[%s3989_s25] ss:$0 sm:$0xff]  ;;  %s3280_s25 = smov 120  }
  0x25   : > { %744 = vmatprep.subr.bf16.mxu0 %v3276_v1  ;;  %v632_v6 = vld [vmem:[%s626_s1] sm:$0xff]  ;;  %s3969_s1 = smov 8  }
  0x26   : > { %v2675_v7 = vcombine.high %v632_v6, %v632_v6  ;;  %v2674_v15 = vcombine.low %v632_v6, %v632_v6  ;;  %v2691_v50 = vld [vmem:[%s3990_s5] ss:$0 sm:$0xff] }
  0x28   : > { %745 = vmatpush1.bf16.msra.mxu0 %v3118_v3  ;;  %2688 = vmatprep.mubr.msk.bf16.mxu0 %vm736_vm0, %v2675_v7 }
  0x29   : > { %746 = vmatprep.subr.bf16.mxu0 %v3276_v1  ;;  %v2689_v32 = vld [vmem:[%s3988_s27] ss:$0 sm:$0xff]  ;;  %s3967_s27 = smov 24  }
  0x2c   : > { %747 = vmatpush1.bf16.msra.mxu0 %v3119_v4 }
  0x2d   : > { %748 = vmatprep.subr.bf16.mxu0 %v3276_v1 }
  0x30   : > { %749 = vmatpush1.bf16.msra.mxu0 %v3120_v5 }
  0x31   : > { %750 = vmatprep.subr.bf16.mxu0 %v3276_v1 }
  0x34   : > { %751 = vmatpush1.bf16.msra.mxu0 %v3121_v8 }
  0x35   : > { %752 = vmatprep.subr.bf16.mxu0 %v3276_v1 }
  0x38   : > { %753 = vmatpush1.bf16.msra.mxu0 %v3122_v9 }
  0x39   : > { %754 = vmatprep.subr.bf16.mxu0 %v3276_v1 }
  0x3c   : > { %755 = vmatpush1.bf16.msra.mxu0 %v3123_v10 }
  0x3d   : > { %756 = vmatprep.subr.bf16.mxu0 %v3276_v1 }
  0x40   : > { %757 = vmatpush1.bf16.msra.mxu0 %v3124_v11 }
  0x41   : > { %758 = vmatprep.subr.bf16.mxu0 %v3276_v1 }
  0x44   : > { %759 = vmatpush1.bf16.msra.mxu0 %v3125_v12 }
  0x45   : > { %760 = vmatprep.subr.bf16.mxu0 %v3276_v1 }
  0x48   : > { %761 = vmatpush1.bf16.msra.mxu0 %v3126_v13  ;;  %v628_v13 = vlaneseq }
  0x49   : > { %762 = vmatprep.subr.bf16.mxu0 %v3276_v1 }
  0x4c   : > { %763 = vmatpush1.bf16.msra.mxu0 %v3127_v14  ;;  %v629_v14 = vand.u32 127, %v628_v13 }
  0x4d   : > { %2923 = vmatprep.subr.bf16.mxu0 %v3277_v44 }
  0x4e   : > { %vm630_vm4 = vcmp.lt.s32.totalorder %v629_v14, 5 }
  0x4f   : > { %773 = vmatmul.mubr.bf16.vlgmr.msra.gmra.mrb[0].mxu0 %v2674_v15  ;;  %v3283_v15 = vmov -1e+09  }
  0x50   : > { %2925 = vmatprep.mubr.msk.bf16.mxu0 %vm3278_vm2, %v3277_v44 }
 0x122   : > { %v774_v17 = vpop.f32.mrb[0].mxu0 }
 0x123   : > { %v775_v18 = vadd.f32 %v774_v17, %v657_v16  ;;  %v776_v19 = vpop.f32.mrb[1].mxu0  ;;  %v3565_v16 = vsel %vm630_vm4, 0.0, %v3283_v15 }
 0x124   : > { %v777_v20 = vpop.f32.mrb[2].mxu0 }
 0x125   : > { %v778_v21 = vpop.f32.mrb[3].mxu0  ;;  %v783_v22 = vsel %vm782_vm1, %v775_v18, 0.0 }
 0x126   : > { %784 = vadd.xlane.f32.xlu0 %v783_v22 }
 0x1b3   : > { %v785_v23 = vpop.xlane.xlu0 %784 }
 0x1b4   : > { %v787_v24 = vmul.f32 0.03125, %v785_v23 }
 0x1b6   : > { %v788_v25 = vsub.f32 %v775_v18, %v787_v24 }
 0x1b8   : > { %v789_v26 = vmul.f32 %v788_v25, %v788_v25 }
 0x1ba   : > { %v790_v27 = vsel %vm782_vm1, %v789_v26, 0.0 }
 0x1bb   : > { %791 = vadd.xlane.f32.xlu0 %v790_v27 }
 0x248   : > { %v792_v28 = vpop.xlane.xlu0 %791 }
 0x249   : > { %v793_v29 = vmul.f32 0.03125, %v792_v28 }
 0x24b   : > { %v794_v30 = vadd.f32 1e-05, %v793_v29 }
 0x24d   : > { %3160 = vrsqrt.f32 %v794_v30 }
 0x257   : > { %v3161_v31 = vpop.eup %3160 }
 0x258   : > { %v796_v33 = vmul.f32 %v3161_v31, %v788_v25 }
 0x25a   : > { %v803_v35 = vmul.f32 %v2689_v32, %v796_v33 }
 0x25c   : > { %v3494_v36 = vadd.f32 %v2690_v34, %v803_v35 }
 0x25e   : > { %v813_v37 = vsel %vm782_vm1, %v3494_v36, 0.0 }
 0x25f   : > { %814 = vadd.xlane.f32.xlu1 %v813_v37 }
 0x2ec   : > { %v815_v38 = vpop.xlane.xlu1 %814 }
 0x2ed   : > { %v816_v39 = vmul.f32 0.03125, %v815_v38 }
 0x2ef   : > { %v817_v40 = vsub.f32 %v3494_v36, %v816_v39 }
 0x2f1   : > { %v818_v41 = vmul.f32 %v817_v40, %v817_v40 }
 0x2f3   : > { %v819_v42 = vsel %vm782_vm1, %v818_v41, 0.0 }
 0x2f4   : > { %820 = vadd.xlane.f32.xlu1 %v819_v42 }
 0x381   : > { %v821_v46 = vpop.xlane.xlu1 %820 }
 0x382   : > { %v822_v47 = vmul.f32 0.03125, %v821_v46 }
 0x384   : > { %v823_v48 = vadd.f32 1e-05, %v822_v47 }
 0x386   : > { %3162 = vrsqrt.f32 %v823_v48 }
 0x390   : > { %v3163_v49 = vpop.eup %3162 }
 0x391   : > { %v825_v51 = vmul.f32 %v3163_v49, %v817_v40 }
 0x393   : > { %v832_v53 = vmul.f32 %v2691_v50, %v825_v51 }
 0x395   : > { %v839_v54 = vadd.f32 %v2692_v52, %v832_v53 }
 0x397   : > { %v840_v55 = vpack.c.bf16 %v839_v54, %v839_v54 }
 0x399   : > { %2878 = vmatmul.mubr.msk.bf16.vlgmr.msra.gmra.mrb[0].mxu1 %vm782_vm1, %v840_v55 }
 0x39a   : > { %2883 = vmatprep.mubr.msk.bf16.mxu1 %vm3278_vm2, %v3277_v44 }
 0x46c   : > { %v901_v57 = vpop.f32.mrb[0].mxu1 }
 0x46d   : > { %v902_v58 = vadd.f32 %v2693_v56, %v901_v57  ;;  %v2879_v59 = vpop.f32.mrb[1].mxu1 }
 0x46e   : > { %v904_v60 = vpop.f32.mrb[2].mxu1 }
 0x46f   : > { %911 = vrot.lane.b32.xlu1 %v902_v58, %s3279_s0  ;;  %908 = vrot.lane.b32.xlu0 %v902_v58, %s3280_s25  ;;  %v2880_v61 = vpop.f32.mrb[3].mxu1  ;;  %v917_v62 = vpack.c.bf16 %v902_v58, %v902_v58 }
 0x473   : > { %914 = vrot.lane.b32.xlu1 %v902_v58, %s3281_s26 }
 0x477   : > { %922 = vrot.lane.b32.xlu1 %v917_v62, %s3282_s23 }
 0x4e1   : > { %v912_v63 = vpop.permute.xlu1 %911  ;;  %v909_v0 = vpop.permute.xlu0 %908 }
 0x4e2   : > { %v3530_v1 = vpack.c.bf16 %v912_v63, %v912_v63  ;;  %v3532_v2 = vpack.c.bf16 %v909_v0, %v909_v0 }
 0x4e4   : > { %972 = vrot.lane.b32.xlu0 %v3532_v2, %s3282_s23  ;;  %1021 = vrot.lane.b32.xlu1 %v3530_v1, %s3282_s23 }
 0x4e5   : > { %v915_v3 = vpop.permute.xlu1 %914 }
 0x4e6   : > { %v3538_v4 = vpack.c.bf16 %v915_v3, %v915_v3 }
 0x4e8   : > { %1070 = vrot.lane.b32.xlu0 %v3538_v4, %s3282_s23 }
 0x4e9   : > { %v923_v5 = vpop.permute.xlu1 %922 }
 0x4ea   : > { %v929_v6 = vsel %vm924_vm3, %v923_v5, 0 }
 0x4eb   : > { %2882 = vmatpush3.bf16.xpose.msra.mxu1 %v929_v6 }
 0x4ec   : > { %2887 = vmatprep.subr.bf16.mxu1 %v3277_v44 }
 0x4f2   : > { %2884 = vmatmul.mubr.msk.bf16.vlgmr.msra.gmra.mrb[4].mxu1 %vm924_vm3, %v917_v62 }
 0x4f3   : > { %2889 = vmatprep.mubr.msk.bf16.mxu1 %vm3278_vm2, %v3277_v44 }
 0x556   : > { %v973_v7 = vpop.permute.xlu0 %972  ;;  %v1022_v9 = vpop.permute.xlu1 %1021 }
 0x557   : > { %v978_v8 = vsel %vm924_vm3, %v973_v7, 0  ;;  %v1027_v10 = vsel %vm924_vm3, %v1022_v9, 0 }
 0x558   : > { %2888 = vmatpush3.bf16.xpose.msra.mxu1 %v978_v8 }
 0x559   : > { %2893 = vmatprep.subr.bf16.mxu1 %v3277_v44 }
 0x55a   : > { %v1071_v11 = vpop.permute.xlu0 %1070 }
 0x55b   : > { %v1076_v12 = vsel %vm924_vm3, %v1071_v11, 0 }
 0x55f   : > { %2890 = vmatmul.mubr.msk.bf16.vlgmr.msra.gmra.mrb[8].mxu1 %vm924_vm3, %v3532_v2 }
 0x560   : > { %2894 = vmatpush3.bf16.xpose.msra.mxu1 %v1027_v10  ;;  %2895 = vmatprep.mubr.msk.bf16.mxu1 %vm3278_vm2, %v3277_v44 }
 0x561   : > { %2899 = vmatprep.subr.bf16.mxu1 %v3277_v44 }
 0x567   : > { %2896 = vmatmul.mubr.msk.bf16.vlgmr.msra.gmra.mrb[12].mxu1 %vm924_vm3, %v3530_v1 }
 0x568   : > { %2900 = vmatpush3.bf16.xpose.msra.mxu1 %v1076_v12  ;;  %2901 = vmatprep.mubr.msk.bf16.mxu1 %vm3278_vm2, %v3277_v44 }
 0x569   : > { %2905 = vmatprep.subr.bf16.mxu1 %v3277_v44 }
 0x56f   : > { %2902 = vmatmul.mubr.msk.bf16.vlgmr.msra.gmra.mrb[16].mxu1 %vm924_vm3, %v3538_v4 }
 0x570   : > { %2907 = vmatprep.mubr.msk.bf16.mxu1 %vm3278_vm2, %v3277_v44 }
 0x5c5   : > { %v965_v17 = vpop.f32.mrb[4].mxu1 }
 0x5c6   : > { %v966_v18 = vadd.f32 %v965_v17, %v3565_v16  ;;  %v2885_v19 = vpop.f32.mrb[5].mxu1 }
 0x5c7   : > { %v968_v20 = vpop.f32.mrb[6].mxu1 }
 0x5c8   : > { %v2886_v21 = vpop.f32.mrb[7].mxu1  ;;  %v1118_v22 = vsel %vm924_vm3, %v966_v18, -inf }
 0x5c9   : > { %1119 = vmax.xlane.f32.xlu1 %v1118_v22 }
 0x5da   : > { %1166 = vrot.lane.b32.xlu1 %v917_v62, %s3284_s28 }
 0x632   : > { %v1014_v23 = vpop.f32.mrb[8].mxu1 }
 0x633   : > { %v1015_v24 = vadd.f32 %v1014_v23, %v3565_v16  ;;  %v2891_v25 = vpop.f32.mrb[9].mxu1 }
 0x634   : > { %v1017_v26 = vpop.f32.mrb[10].mxu1 }
 0x635   : > { %v2892_v27 = vpop.f32.mrb[11].mxu1  ;;  %v1121_v28 = vsel %vm924_vm3, %v1015_v24, -inf }
 0x636   : > { %1122 = vmax.xlane.f32.xlu0 %v1121_v28  ;;  %v3132_v28 = vld [vmem:[%s3947_s9] sm:$0xff]  }
 0x63a   : > { %v1063_v29 = vpop.f32.mrb[12].mxu1 }
 0x63b   : > { %v1064_v30 = vadd.f32 %v1063_v29, %v3565_v16  ;;  %v2897_v31 = vpop.f32.mrb[13].mxu1  ;;  %v3133_v29 = vld [vmem:[%s3947_s9 + $0x8] sm:$0xff]  }
 0x63c   : > { %v1066_v32 = vpop.f32.mrb[14].mxu1 }
 0x63d   : > { %v2898_v33 = vpop.f32.mrb[15].mxu1  ;;  %v1124_v34 = vsel %vm924_vm3, %v1064_v30, -inf }
 0x63e   : > { %1125 = vmax.xlane.f32.xlu0 %v1124_v34 }
 0x642   : > { %v1112_v35 = vpop.f32.mrb[16].mxu1 }
 0x643   : > { %v1113_v37 = vadd.f32 %v1112_v35, %v3565_v16  ;;  %v2903_v38 = vpop.f32.mrb[17].mxu1 }
 0x644   : > { %v1115_v39 = vpop.f32.mrb[18].mxu1 }
 0x645   : > { %v2904_v40 = vpop.f32.mrb[19].mxu1  ;;  %v1127_v41 = vsel %vm924_vm3, %v1113_v37, -inf }
 0x646   : > { %1128 = vmax.xlane.f32.xlu0 %v1127_v41 }
 0x656   : > { %v1120_v42 = vpop.xlane.xlu1 %1119 }
 0x657   : > { %v1130_v43 = vsub.f32 %v966_v18, %v1120_v42 }
 0x659   : > { %v1134_v45 = vmul.f32 1.442695, %v1130_v43 }
 0x65a   : > { %v1167_v46 = vpop.permute.xlu1 %1166 }
 0x65b   : > { %3164 = vpow2.f32 %v1134_v45  ;;  %v1173_v47 = vsel %vm1171_vm5, %v1167_v46, 0 }
 0x65c   : > { %2906 = vmatpush3.bf16.msra.mxu1 %v1173_v47 }
 0x65d   : > { %2911 = vmatprep.subr.bf16.mxu1 %v3277_v44 }
 0x665   : > { %v3165_v48 = vpop.eup %3164 }
 0x666   : > { %v1142_v49 = vsel %vm924_vm3, %v3165_v48, 0.0 }
 0x667   : > { %1143 = vadd.xlane.f32.xlu1 %v1142_v49 }
 0x6c3   : > { %v1123_v50 = vpop.xlane.xlu0 %1122 }
 0x6c4   : > { %v1131_v51 = vsub.f32 %v1015_v24, %v1123_v50 }
 0x6c6   : > { %v1136_v52 = vmul.f32 1.442695, %v1131_v51  ;;  %v2705_v51 = vld [vmem:[%s3948_s10] ss:$0 sm:$0xff] }
 0x6c8   : > { %3166 = vpow2.f32 %v1136_v52 }
 0x6cb   : > { %v1126_v53 = vpop.xlane.xlu0 %1125 }
 0x6cc   : > { %v1132_v54 = vsub.f32 %v1064_v30, %v1126_v53 }
 0x6ce   : > { %v1138_v55 = vmul.f32 1.442695, %v1132_v54 }
 0x6d0   : > { %3168 = vpow2.f32 %v1138_v55 }
 0x6d2   : > { %v3167_v56 = vpop.eup %3166 }
 0x6d3   : > { %v1129_v57 = vpop.xlane.xlu0 %1128  ;;  %v1145_v58 = vsel %vm924_vm3, %v3167_v56, 0.0 }
 0x6d4   : > { %v1133_v59 = vsub.f32 %v1113_v37, %v1129_v57  ;;  %1146 = vadd.xlane.f32.xlu0 %v1145_v58 }
 0x6d6   : > { %v1140_v60 = vmul.f32 1.442695, %v1133_v59 }
 0x6d8   : > { %3170 = vpow2.f32 %v1140_v60 }
 0x6da   : > { %v3169_v61 = vpop.eup %3168 }
 0x6db   : > { %v1148_v62 = vsel %vm924_vm3, %v3169_v61, 0.0 }
 0x6dc   : > { %1149 = vadd.xlane.f32.xlu1 %v1148_v62 }
 0x6e2   : > { %v3171_v63 = vpop.eup %3170 }
 0x6e3   : > { %v1151_v0 = vsel %vm924_vm3, %v3171_v63, 0.0 }
 0x6e4   : > { %1152 = vadd.xlane.f32.xlu0 %v1151_v0  ;;  %v3134_v0 = vld [vmem:[%s3951_s13] sm:$0xff]  }
 0x6ed   : > { %1263 = vrot.lane.b32.xlu1 %v3530_v1, %s3284_s28 }
 0x6f1   : > { %1311 = vrot.lane.b32.xlu1 %v3538_v4, %s3284_s28 }
 0x6f4   : > { %v1144_v3 = vpop.xlane.xlu1 %1143 }
 0x6f5   : > { %3172 = vrcp.f32 %v1144_v3 }
 0x6fa   : > { %1215 = vrot.lane.b32.xlu0 %v3532_v2, %s3284_s28 }
 0x6ff   : > { %v3173_v5 = vpop.eup %3172 }
 0x700   : > { %v1158_v6 = vmul.f32 %v3173_v5, %v3165_v48 }
 0x702   : > { %v1162_v7 = vpack.c.bf16 %v1158_v6, %v1158_v6 }
 0x704   : > { %2908 = vmatmul.mubr.msk.bf16.vlgmr.msra.gmra.mrb[20].mxu1 %vm924_vm3, %v1162_v7 }
 0x705   : > { %2913 = vmatprep.mubr.msk.bf16.mxu1 %vm3278_vm2, %v3277_v44 }
 0x761   : > { %v1147_v8 = vpop.xlane.xlu0 %1146 }
 0x762   : > { %3174 = vrcp.f32 %v1147_v8  ;;  %v2709_v8 = vld [vmem:[%s3949_s11] ss:$0 sm:$0xff] }
 0x769   : > { %v1150_v9 = vpop.xlane.xlu1 %1149 }
 0x76a   : > { %3176 = vrcp.f32 %v1150_v9 }
 0x76c   : > { %v3175_v10 = vpop.eup %3174 }
 0x76d   : > { %v1264_v1 = vpop.permute.xlu1 %1263  ;;  %v1159_v2 = vmul.f32 %v3175_v10, %v3167_v56 }
 0x76e   : > { %v1269_v18 = vsel %vm1171_vm5, %v1264_v1, 0  ;;  %v2710_v1 = vld [vmem:[%s3950_s12] ss:$0 sm:$0xff] }
 0x76f   : > { %v1163_v15 = vpack.c.bf16 %v1159_v2, %v1159_v2  ;;  %v3137_v2 = vld [vmem:[%s3953_s15 + $0x8] sm:$0xff]  }
 0x771   : > { %v1312_v4 = vpop.permute.xlu1 %1311  ;;  %v1153_v11 = vpop.xlane.xlu0 %1152 }
 0x772   : > { %v1317_v12 = vsel %vm1171_vm5, %v1312_v4, 0  ;;  %3178 = vrcp.f32 %v1153_v11 }
 0x773   : > { %2924 = vmatpush3.bf16.msra.mxu0 %v1317_v12  ;;  %v3136_v12 = vld [vmem:[%s3953_s15] sm:$0xff]  }
 0x774   : > { %2937 = vmatprep.subr.bf16.mxu0 %v3277_v44  ;;  %v3177_v17 = vpop.eup %3176 }
 0x775   : > { %v1216_v13 = vpop.permute.xlu0 %1215  ;;  %v1160_v20 = vmul.f32 %v3177_v17, %v3169_v61  ;;  %v3141_v17 = vld [vmem:[%s3953_s15 + $0x28] sm:$0xff]  }
 0x776   : > { %v1221_v14 = vsel %vm1171_vm5, %v1216_v13, 0  ;;  %v3138_v13 = vld [vmem:[%s3953_s15 + $0x10] sm:$0xff]  }
 0x777   : > { %2912 = vmatpush3.bf16.msra.mxu1 %v1221_v14  ;;  %v1164_v23 = vpack.c.bf16 %v1160_v20, %v1160_v20  ;;  %v3139_v14 = vld [vmem:[%s3953_s15 + $0x18] sm:$0xff]   ;;  %v2711_v20 = vld [vmem:[%s3952_s14] ss:$0 sm:$0xff] }
 0x778   : > { %2917 = vmatprep.subr.bf16.mxu1 %v3277_v44 }
 0x77a   : > { %2914 = vmatmul.mubr.msk.bf16.vlgmr.msra.gmra.mrb[24].mxu1 %vm924_vm3, %v1163_v15  ;;  %v3140_v15 = vld [vmem:[%s3953_s15 + $0x20] sm:$0xff]  }
 0x77b   : > { %2918 = vmatpush3.bf16.msra.mxu1 %v1269_v18  ;;  %2919 = vmatprep.mubr.msk.bf16.mxu1 %vm3278_vm2, %v3277_v44  ;;  %v3142_v18 = vld [vmem:[%s3953_s15 + $0x30] sm:$0xff]  }
 0x77c   : > { %v3179_v19 = vpop.eup %3178  ;;  %2929 = vmatprep.subr.bf16.mxu1 %v3277_v44 }
 0x77d   : > { %v1161_v21 = vmul.f32 %v3179_v19, %v3171_v63  ;;  %v3143_v19 = vld [vmem:[%s3953_s15 + $0x38] sm:$0xff]  }
 0x77f   : > { %v1165_v22 = vpack.c.bf16 %v1161_v21, %v1161_v21 }
 0x781   : > { %2926 = vmatmul.mubr.msk.bf16.vlgmr.msra.gmra.mrb[4].mxu0 %vm924_vm3, %v1165_v22 }
 0x782   : > { %2920 = vmatmul.mubr.msk.bf16.vlgmr.msra.gmra.mrb[28].mxu1 %vm924_vm3, %v1164_v23  ;;  %2941 = vmatprep.mubr.msk.bf16.mxu0 %vm3278_vm2, %v3277_v44 }
 0x783   : > { %2933 = vmatprep.mubr.msk.bf16.mxu1 %vm3278_vm2, %v3277_v44  ;;  %2930 = vmatpush3.bf16.msra.mxu1 %v3132_v28 }
 0x784   : > { %2931 = vmatprep.subr.bf16.mxu1 %v3277_v44  ;;  %2938 = vmatpush3.bf16.msra.mxu0 %v3134_v0 }
 0x785   : > { %2939 = vmatprep.subr.bf16.mxu0 %v3277_v44 }
 0x787   : > { %2932 = vmatpush3.bf16.msra.mxu1 %v3133_v29 }
 0x788   : > { %2945 = vmatprep.subr.bf16.mxu1 %v3277_v44 }
 0x7d7   : > { %v1209_v24 = vpop.f32.mrb[20].mxu1 }
 0x7d8   : > { %v2909_v25 = vpop.f32.mrb[21].mxu1 }
 0x7d9   : > { %v1212_v26 = vpop.f32.mrb[22].mxu1 }
 0x7da   : > { %v2910_v27 = vpop.f32.mrb[23].mxu1 }
 0x84d   : > { %v1257_v30 = vpop.f32.mrb[24].mxu1 }
 0x84e   : > { %1360 = vrot.lane.b32.xlu1 %v1257_v30, %s3969_s1  ;;  %v2915_v31 = vpop.f32.mrb[25].mxu1  ;;  %s620_s1 = sand.u32 1, %s3266_s22  }
 0x84f   : > { %v1260_v32 = vpop.f32.mrb[26].mxu1  ;;  %s621_s3 = scalar_lea.vmem [#allocation2], %s620_s1 }
 0x850   : > { %v2916_v33 = vpop.f32.mrb[27].mxu1  ;;  %s2613_s20 = sshll.u32 %s621_s3, 4  ;;  %s3893_s20 = int_to_ptr.vmem [resolvable:$true] %s2613_s20 }
 0x851   : > { %s3212_s24 = scalar_lea.vmem %s3893_s20, 16 }
 0x852   : > { %p3213_p11 = scmp.ne.s32.totalorder %s3893_s20, %s3212_s24 }
 0x854   : > { %v1353_v34 = vpop.f32.mrb[4].mxu0  ;;  %p3214_p12 = pnand %p3213_p11, %p3432_p5 }
 0x855   : > { %v2927_v35 = vpop.f32.mrb[5].mxu0  ;;  %1368 = vrot.lane.b32.xlu1 %v1353_v34, %s3967_s27  ;;  %v1305_v37 = vpop.f32.mrb[28].mxu1  ;;  %v2724_v34 = vld [vmem:[%s3954_s16] ss:$0 sm:$0xff]  ;;  %s3992_s27 = smov 16  }
 0x856   : > { %v1356_v38 = vpop.f32.mrb[6].mxu0  ;;  %1364 = vrot.lane.b32.xlu0 %v1305_v37, %s3968_s30  ;;  %v2921_v39 = vpop.f32.mrb[29].mxu1  ;;  %s3993_s30 = smov 24   ;;  %p3215_p13 = pneg %p3214_p12 }
 0x857   : > { %v1308_v40 = vpop.f32.mrb[30].mxu1  ;;  %v2928_v41 = vpop.f32.mrb[7].mxu0 }
 0x858   : > { %v2922_v42 = vpop.f32.mrb[31].mxu1 }
 0x8c0   : > { %v1361_v43 = vpop.permute.xlu1 %1360 }
 0x8c1   : > { %v1371_v45 = vsel %vm924_vm3, %v1209_v24, %v1361_v43 }
 0x8c7   : > { %v1369_v47 = vpop.permute.xlu1 %1368 }
 0x8c8   : > { %v1365_v46 = vpop.permute.xlu0 %1364 }
 0x8c9   : > { %v1373_v48 = vsel %vm1372_vm6, %v1371_v45, %v1365_v46 }
 0x8ca   : > { %v1375_v49 = vsel %vm1374_vm7, %v1373_v48, %v1369_v47  ;;  %v3144_v48 = vld [vmem:[%s3945_s7 + $0x10] sm:$0xff]  }
 0x8cb   : > { %v1376_v50 = vpack.c.bf16 %v1375_v49, %v1375_v49  ;;  %v3145_v49 = vld [vmem:[%s3945_s7 + $0x18] sm:$0xff]  }
 0x8cd   : > { %2934 = vmatmul.mubr.msk.bf16.vlgmr.msra.gmra.mrb[32].mxu1 %vm782_vm1, %v1376_v50 }
 0x8ce   : > { %2961 = vmatprep.mubr.msk.bf16.mxu1 %vm3278_vm2, %v3277_v44  ;;  %2946 = vmatpush3.bf16.msra.mxu1 %v3136_v12 }
 0x8cf   : > { %2947 = vmatprep.subr.bf16.mxu1 %v3277_v44 }
 0x8d2   : > { %2948 = vmatpush3.bf16.msra.mxu1 %v3137_v2 }
 0x8d3   : > { %2949 = vmatprep.subr.bf16.mxu1 %v3277_v44 }
 0x8d6   : > { %2950 = vmatpush3.bf16.msra.mxu1 %v3138_v13 }
 0x8d7   : > { %2951 = vmatprep.subr.bf16.mxu1 %v3277_v44 }
 0x8da   : > { %2952 = vmatpush3.bf16.msra.mxu1 %v3139_v14 }
 0x8db   : > { %2953 = vmatprep.subr.bf16.mxu1 %v3277_v44 }
 0x8de   : > { %2954 = vmatpush3.bf16.msra.mxu1 %v3140_v15 }
 0x8df   : > { %2955 = vmatprep.subr.bf16.mxu1 %v3277_v44 }
 0x8e2   : > { %2956 = vmatpush3.bf16.msra.mxu1 %v3141_v17 }
 0x8e3   : > { %2957 = vmatprep.subr.bf16.mxu1 %v3277_v44 }
 0x8e6   : > { %2958 = vmatpush3.bf16.msra.mxu1 %v3142_v18 }
 0x8e7   : > { %2959 = vmatprep.subr.bf16.mxu1 %v3277_v44 }
 0x8ea   : > { %2960 = vmatpush3.bf16.msra.mxu1 %v3143_v19 }
 0x8eb   : > { %2991 = vmatprep.subr.bf16.mxu1 %v3277_v44 }
 0x9a0   : > { %v1437_v52 = vpop.f32.mrb[32].mxu1 }
 0x9a1   : > { %v1438_v53 = vadd.f32 %v2705_v51, %v1437_v52  ;;  %v2935_v54 = vpop.f32.mrb[33].mxu1 }
 0x9a2   : > { %v1440_v55 = vpop.f32.mrb[34].mxu1  ;;  %v2727_v54 = vld [vmem:[%s3990_s5 + $0x1] ss:$0 sm:$0xff] }
 0x9a3   : > { %v3627_v56 = vadd.f32 %v1438_v53, %v3494_v36  ;;  %v2936_v57 = vpop.f32.mrb[35].mxu1  ;;  %v3135_v36 = vld [vmem:[%s3951_s13 + $0x8] sm:$0xff]  }
 0x9a4   : > { %2940 = vmatpush3.bf16.msra.mxu0 %v3135_v36 }
 0x9a5   : > { %v1446_v58 = vsel %vm782_vm1, %v3627_v56, 0.0  ;;  %2965 = vmatprep.subr.bf16.mxu0 %v3277_v44 }
 0x9a6   : > { %1447 = vadd.xlane.f32.xlu0 %v1446_v58 }
 0xa33   : > { %v1448_v59 = vpop.xlane.xlu0 %1447 }
 0xa34   : > { %v1449_v60 = vmul.f32 0.03125, %v1448_v59 }
 0xa36   : > { %v1450_v61 = vsub.f32 %v3627_v56, %v1449_v60  ;;  %v2734_v60 = vld [vmem:[%s3946_s8 + $0x1] ss:$0 sm:$0xff] }
 0xa38   : > { %v1451_v62 = vmul.f32 %v1450_v61, %v1450_v61 }
 0xa3a   : > { %v1452_v63 = vsel %vm782_vm1, %v1451_v62, 0.0 }
 0xa3b   : > { %1453 = vadd.xlane.f32.xlu1 %v1452_v63 }
 0xac8   : > { %v1454_v3 = vpop.xlane.xlu1 %1453 }
 0xac9   : > { %v1455_v5 = vmul.f32 0.03125, %v1454_v3 }
 0xacb   : > { %v1456_v6 = vadd.f32 1e-05, %v1455_v5 }
 0xacd   : > { %3180 = vrsqrt.f32 %v1456_v6 }
 0xad7   : > { %v3181_v7 = vpop.eup %3180 }
 0xad8   : > { %v1458_v9 = vmul.f32 %v3181_v7, %v1450_v61 }
 0xada   : > { %v1465_v10 = vmul.f32 %v2709_v8, %v1458_v9 }
 0xadc   : > { %v1472_v4 = vadd.f32 %v2710_v1, %v1465_v10 }
 0xade   : > { %v1473_v11 = vpack.c.bf16 %v1472_v4, %v1472_v4 }
 0xae0   : > { %2942 = vmatmul.mubr.msk.bf16.vlgmr.msra.gmra.mrb[8].mxu0 %vm782_vm1, %v1473_v11 }
 0xae1   : > { %2969 = vmatprep.mubr.msk.bf16.mxu0 %vm3278_vm2, %v3277_v44  ;;  %2966 = vmatpush3.bf16.msra.mxu0 %v3144_v48 }
 0xae2   : > { %2967 = vmatprep.subr.bf16.mxu0 %v3277_v44 }
 0xae5   : > { %2968 = vmatpush3.bf16.msra.mxu0 %v3145_v49 }
 0xae6   : > { %2973 = vmatprep.subr.bf16.mxu0 %v3277_v44 }
 0xbb3   : > { %v1534_v21 = vpop.f32.mrb[8].mxu0 }
 0xbb4   : > { %v1535_v22 = vadd.f32 %v2711_v20, %v1534_v21  ;;  %v2943_v23 = vpop.f32.mrb[9].mxu0 }
 0xbb5   : > { %v1537_v24 = vpop.f32.mrb[10].mxu0 }
 0xbb6   : > { %v2715_v25 = vmul.f32 -1.702, %v1535_v22  ;;  %v2944_v26 = vpop.f32.mrb[11].mxu0 }
 0xbb8   : > { %v1542_v27 = vmul.f32 1.442695, %v2715_v25 }
 0xbba   : > { %3182 = vpow2.f32 %v1542_v27 }
 0xbc4   : > { %v3183_v28 = vpop.eup %3182 }
 0xbc5   : > { %v1544_v29 = vadd.f32 1.0, %v3183_v28 }
 0xbc7   : > { %3184 = vrcp.f32 %v1544_v29 }
 0xbd1   : > { %v3185_v30 = vpop.eup %3184 }
 0xbd2   : > { %v1547_v31 = vmul.f32 %v3185_v30, %v1535_v22 }
 0xbd4   : > { %v1548_v32 = vpack.c.bf16 %v1547_v31, %v1547_v31 }
 0xbd6   : > { %2962 = vmatmul.mubr.bf16.vlgmr.msra.gmra.mrb[36].mxu1 %v1548_v32 }
 0xbd7   : > { %2993 = vmatprep.mubr.msk.bf16.mxu1 %vm3278_vm2, %v3277_v44 }
 0xca9   : > { %v1647_v33 = vpop.f32.mrb[36].mxu1 }
 0xcaa   : > { %v1653_v35 = vadd.f32 %v1647_v33, %v3627_v56  ;;  %v2963_v37 = vpop.f32.mrb[37].mxu1  ;;  %v2728_v56 = vld [vmem:[%s3944_s6 + $0x1] ss:$0 sm:$0xff] }
 0xcab   : > { %v1650_v38 = vpop.f32.mrb[38].mxu1 }
 0xcac   : > { %v3691_v39 = vadd.f32 %v2724_v34, %v1653_v35  ;;  %v2964_v40 = vpop.f32.mrb[39].mxu1 }
 0xcae   : > { %v1666_v41 = vsel %vm782_vm1, %v3691_v39, 0.0 }
 0xcaf   : > { %1667 = vadd.xlane.f32.xlu0 %v1666_v41 }
 0xd3c   : > { %v1668_v42 = vpop.xlane.xlu0 %1667 }
 0xd3d   : > { %v1669_v43 = vmul.f32 0.03125, %v1668_v42 }
 0xd3f   : > { %v1670_v45 = vsub.f32 %v3691_v39, %v1669_v43 }
 0xd41   : > { %v1671_v46 = vmul.f32 %v1670_v45, %v1670_v45 }
 0xd43   : > { %v1672_v47 = vsel %vm782_vm1, %v1671_v46, 0.0 }
 0xd44   : > { %1673 = vadd.xlane.f32.xlu0 %v1672_v47 }
 0xdd1   : > { %v1674_v50 = vpop.xlane.xlu0 %1673 }
 0xdd2   : > { %v1675_v51 = vmul.f32 0.03125, %v1674_v50 }
 0xdd4   : > { %v1676_v52 = vadd.f32 1e-05, %v1675_v51 }
 0xdd6   : > { %3186 = vrsqrt.f32 %v1676_v52 }
 0xde0   : > { %v3187_v53 = vpop.eup %3186 }
 0xde1   : > { %v1678_v55 = vmul.f32 %v3187_v53, %v1670_v45 }
 0xde3   : > { %v1685_v57 = vmul.f32 %v2727_v54, %v1678_v55 }
 0xde5   : > { %v1692_v58 = vadd.f32 %v2728_v56, %v1685_v57 }
 0xde7   : > { %v1693_v59 = vpack.c.bf16 %v1692_v58, %v1692_v58 }
 0xde9   : > { %2970 = vmatmul.mubr.msk.bf16.vlgmr.msra.gmra.mrb[12].mxu0 %vm782_vm1, %v1693_v59 }
 0xdea   : > { %2975 = vmatprep.mubr.msk.bf16.mxu0 %vm3278_vm2, %v3277_v44 }
 0xebc   : > { %v1756_v61 = vpop.f32.mrb[12].mxu0 }
 0xebd   : > { %v1757_v62 = vadd.f32 %v2734_v60, %v1756_v61  ;;  %v2971_v63 = vpop.f32.mrb[13].mxu0 }
 0xebe   : > { %v1759_v0 = vpop.f32.mrb[14].mxu0 }
 0xebf   : > { %1766 = vrot.lane.b32.xlu1 %v1757_v62, %s3279_s0  ;;  %1763 = vrot.lane.b32.xlu0 %v1757_v62, %s3280_s25  ;;  %v2972_v36 = vpop.f32.mrb[15].mxu0  ;;  %v1772_v3 = vpack.c.bf16 %v1757_v62, %v1757_v62  ;;  %s2798_s0 = sshll.u32 %s3415_s2, 4  ;;  %s3288_s2 = smov [#allocation2]  }
 0xec0   : > { %s3216_s29 = sshll.u32 %s3288_s2, 4  ;;  %s3217_s29 = int_to_ptr.vmem [resolvable:$false] %s3216_s29 }
 0xec1   : > { %s3218_s5 = scalar_lea.vmem %s3217_s29, 32  ;;  %p3219_p0 = scmp.lt.s32.totalorder %s3893_s20, %s3217_s29 }
 0xec2   : > { %p3220_p1 = scmp.lt.s32.totalorder %s3218_s5, %s3212_s24 }
 0xec3   : > { %1769 = vrot.lane.b32.xlu1 %v1757_v62, %s3281_s26 }
 0xec4   : > { %p3221_p2 = por %p3220_p1, %p3219_p0 }
 0xec6   : > { %p3222_p3 = pnand %p3221_p2, %p3215_p13 }
 0xec7   : > { %1777 = vrot.lane.b32.xlu1 %v1772_v3, %s3282_s23 }
 0xf31   : > { %v1767_v5 = vpop.permute.xlu1 %1766  ;;  %v1764_v6 = vpop.permute.xlu0 %1763 }
 0xf32   : > { %v3721_v7 = vpack.c.bf16 %v1767_v5, %v1767_v5  ;;  %v3723_v8 = vpack.c.bf16 %v1764_v6, %v1764_v6 }
 0xf34   : > { %1826 = vrot.lane.b32.xlu0 %v3723_v8, %s3282_s23  ;;  %1875 = vrot.lane.b32.xlu1 %v3721_v7, %s3282_s23 }
 0xf35   : > { %v1770_v9 = vpop.permute.xlu1 %1769 }
 0xf36   : > { %v3729_v1 = vpack.c.bf16 %v1770_v9, %v1770_v9 }
 0xf38   : > { %1924 = vrot.lane.b32.xlu0 %v3729_v1, %s3282_s23  ;;  %s3994_s23 = sld [smem:[#allocation17_spill]] }
 0xf39   : > { %v1778_v10 = vpop.permute.xlu1 %1777 }
 0xf3a   : > { %v1783_v4 = vsel %vm924_vm3, %v1778_v10, 0 }
 0xf3b   : > { %2974 = vmatpush3.bf16.xpose.msra.mxu0 %v1783_v4 }
 0xf3c   : > { %2979 = vmatprep.subr.bf16.mxu0 %v3277_v44 }
 0xf42   : > { %2976 = vmatmul.mubr.msk.bf16.vlgmr.msra.gmra.mrb[16].mxu0 %vm924_vm3, %v1772_v3 }
 0xf43   : > { %2981 = vmatprep.mubr.msk.bf16.mxu0 %vm3278_vm2, %v3277_v44 }
 0xfa6   : > { %v1827_v11 = vpop.permute.xlu0 %1826  ;;  %v1876_v14 = vpop.permute.xlu1 %1875 }
 0xfa7   : > { %v1832_v12 = vsel %vm924_vm3, %v1827_v11, 0  ;;  %v1881_v15 = vsel %vm924_vm3, %v1876_v14, 0 }
 0xfa8   : > { %2980 = vmatpush3.bf16.xpose.msra.mxu0 %v1832_v12 }
 0xfa9   : > { %2985 = vmatprep.subr.bf16.mxu0 %v3277_v44 }
 0xfaa   : > { %v1925_v2 = vpop.permute.xlu0 %1924 }
 0xfab   : > { %v1930_v13 = vsel %vm924_vm3, %v1925_v2, 0 }
 0xfac   : > { %2992 = vmatpush3.bf16.xpose.msra.mxu1 %v1930_v13 }
 0xfad   : > { %3003 = vmatprep.subr.bf16.mxu1 %v3277_v44 }
 0xfaf   : > { %2982 = vmatmul.mubr.msk.bf16.vlgmr.msra.gmra.mrb[20].mxu0 %vm924_vm3, %v3723_v8 }
 0xfb0   : > { %2986 = vmatpush3.bf16.xpose.msra.mxu0 %v1881_v15  ;;  %2987 = vmatprep.mubr.msk.bf16.mxu0 %vm3278_vm2, %v3277_v44 }
 0xfb1   : > { %2997 = vmatprep.subr.bf16.mxu0 %v3277_v44 }
 0xfb3   : > { %2994 = vmatmul.mubr.msk.bf16.vlgmr.msra.gmra.mrb[40].mxu1 %vm924_vm3, %v3729_v1 }
 0xfb4   : > { %3005 = vmatprep.mubr.msk.bf16.mxu1 %vm3278_vm2, %v3277_v44 }
 0xfb7   : > { %2988 = vmatmul.mubr.msk.bf16.vlgmr.msra.gmra.mrb[24].mxu0 %vm924_vm3, %v3721_v7 }
 0xfb8   : > { %2999 = vmatprep.mubr.msk.bf16.mxu0 %vm3278_vm2, %v3277_v44 }
0x1015   : > { %v1819_v17 = vpop.f32.mrb[16].mxu0 }
0x1016   : > { %v1820_v18 = vadd.f32 %v1819_v17, %v3565_v16  ;;  %v2977_v19 = vpop.f32.mrb[17].mxu0 }
0x1017   : > { %v1822_v20 = vpop.f32.mrb[18].mxu0 }
0x1018   : > { %v2978_v21 = vpop.f32.mrb[19].mxu0  ;;  %v1972_v22 = vsel %vm924_vm3, %v1820_v18, -inf }
0x1019   : > { %1973 = vmax.xlane.f32.xlu1 %v1972_v22 }
0x102a   : > { %2020 = vrot.lane.b32.xlu1 %v1772_v3, %s3284_s28 }
0x1082   : > { %v1868_v23 = vpop.f32.mrb[20].mxu0 }
0x1083   : > { %v1869_v24 = vadd.f32 %v1868_v23, %v3565_v16  ;;  %v2983_v25 = vpop.f32.mrb[21].mxu0 }
0x1084   : > { %v1871_v26 = vpop.f32.mrb[22].mxu0 }
0x1085   : > { %v2984_v27 = vpop.f32.mrb[23].mxu0  ;;  %v1975_v28 = vsel %vm924_vm3, %v1869_v24, -inf }
0x1086   : > { %1976 = vmax.xlane.f32.xlu0 %v1975_v28  ;;  %v1966_v29 = vpop.f32.mrb[40].mxu1  ;;  %v3146_v27 = vld [vmem:[%s3947_s9 + $0x10] sm:$0xff]   ;;  %v3147_v28 = vld [vmem:[%s3947_s9 + $0x18] sm:$0xff]  }
0x1087   : > { %v2995_v30 = vpop.f32.mrb[41].mxu1  ;;  %v1967_v38 = vadd.f32 %v1966_v29, %v3565_v16 }
0x1088   : > { %v1969_v31 = vpop.f32.mrb[42].mxu1 }
0x1089   : > { %v2996_v32 = vpop.f32.mrb[43].mxu1  ;;  %v1981_v42 = vsel %vm924_vm3, %v1967_v38, -inf }
0x108a   : > { %v1917_v33 = vpop.f32.mrb[24].mxu0 }
0x108b   : > { %v1918_v34 = vadd.f32 %v1917_v33, %v3565_v16  ;;  %v2989_v35 = vpop.f32.mrb[25].mxu0 }
0x108c   : > { %v1920_v37 = vpop.f32.mrb[26].mxu0 }
0x108d   : > { %v2990_v40 = vpop.f32.mrb[27].mxu0  ;;  %v1978_v41 = vsel %vm924_vm3, %v1918_v34, -inf }
0x108e   : > { %1979 = vmax.xlane.f32.xlu0 %v1978_v41 }
0x1092   : > { %1982 = vmax.xlane.f32.xlu0 %v1981_v42 }
0x10a6   : > { %v1974_v43 = vpop.xlane.xlu1 %1973 }
0x10a7   : > { %v1984_v45 = vsub.f32 %v1820_v18, %v1974_v43 }
0x10a9   : > { %v1988_v46 = vmul.f32 1.442695, %v1984_v45 }
0x10aa   : > { %v2021_v47 = vpop.permute.xlu1 %2020 }
0x10ab   : > { %3188 = vpow2.f32 %v1988_v46  ;;  %v2026_v48 = vsel %vm1171_vm5, %v2021_v47, 0 }
0x10ac   : > { %2998 = vmatpush3.bf16.msra.mxu0 %v2026_v48 }
0x10ad   : > { %3009 = vmatprep.subr.bf16.mxu0 %v3277_v44 }
0x10b5   : > { %v3189_v49 = vpop.eup %3188 }
0x10b6   : > { %v1996_v16 = vsel %vm924_vm3, %v3189_v49, 0.0 }
0x10b7   : > { %1997 = vadd.xlane.f32.xlu1 %v1996_v16 }
0x10c8   : > { %2116 = vrot.lane.b32.xlu1 %v3721_v7, %s3284_s28 }
0x1113   : > { %v1977_v50 = vpop.xlane.xlu0 %1976 }
0x1114   : > { %v1985_v51 = vsub.f32 %v1869_v24, %v1977_v50  ;;  %v2751_v50 = vld [vmem:[%s3948_s10 + $0x1] ss:$0 sm:$0xff] }
0x1116   : > { %v1990_v52 = vmul.f32 1.442695, %v1985_v51 }
0x1118   : > { %3190 = vpow2.f32 %v1990_v52 }
0x111b   : > { %v1980_v53 = vpop.xlane.xlu0 %1979 }
0x111c   : > { %v1986_v54 = vsub.f32 %v1918_v34, %v1980_v53 }
0x111e   : > { %v1992_v55 = vmul.f32 1.442695, %v1986_v54 }
0x111f   : > { %v1983_v56 = vpop.xlane.xlu0 %1982 }
0x1120   : > { %3192 = vpow2.f32 %v1992_v55  ;;  %v1987_v57 = vsub.f32 %v1967_v38, %v1983_v56 }
0x1122   : > { %v3191_v58 = vpop.eup %3190  ;;  %v1994_v59 = vmul.f32 1.442695, %v1987_v57 }
0x1123   : > { %v1999_v60 = vsel %vm924_vm3, %v3191_v58, 0.0 }
0x1124   : > { %3194 = vpow2.f32 %v1994_v59  ;;  %2000 = vadd.xlane.f32.xlu0 %v1999_v60 }
0x112a   : > { %v3193_v61 = vpop.eup %3192 }
0x112b   : > { %v2002_v62 = vsel %vm924_vm3, %v3193_v61, 0.0 }
0x112c   : > { %2003 = vadd.xlane.f32.xlu1 %v2002_v62 }
0x112e   : > { %v3195_v63 = vpop.eup %3194 }
0x112f   : > { %v2005_v0 = vsel %vm924_vm3, %v3195_v63, 0.0 }
0x1130   : > { %2006 = vadd.xlane.f32.xlu0 %v2005_v0 }
0x113d   : > { %2164 = vrot.lane.b32.xlu1 %v3729_v1, %s3284_s28 }
0x1144   : > { %v1998_v36 = vpop.xlane.xlu1 %1997 }
0x1145   : > { %3196 = vrcp.f32 %v1998_v36 }
0x1146   : > { %2068 = vrot.lane.b32.xlu0 %v3723_v8, %s3284_s28  ;;  %s3991_s28 = smov 8  }
0x1148   : > { %v2117_v6 = vpop.permute.xlu1 %2116 }
0x1149   : > { %v2122_v9 = vsel %vm1171_vm5, %v2117_v6, 0  ;;  %v2757_v6 = vld [vmem:[%s3949_s11 + $0x1] ss:$0 sm:$0xff] }
0x114f   : > { %v3197_v3 = vpop.eup %3196 }
0x1150   : > { %v2012_v5 = vmul.f32 %v3197_v3, %v3189_v49 }
0x1152   : > { %v2016_v7 = vpack.c.bf16 %v2012_v5, %v2012_v5 }
0x1154   : > { %3000 = vmatmul.mubr.msk.bf16.vlgmr.msra.gmra.mrb[28].mxu0 %vm924_vm3, %v2016_v7 }
0x1155   : > { %3010 = vmatpush3.bf16.msra.mxu0 %v2122_v9  ;;  %3011 = vmatprep.mubr.msk.bf16.mxu0 %vm3278_vm2, %v3277_v44  ;;  %v2758_v9 = vld [vmem:[%s3950_s12 + $0x1] ss:$0 sm:$0xff] }
0x1156   : > { %3021 = vmatprep.subr.bf16.mxu0 %v3277_v44 }
0x11b1   : > { %v2001_v1 = vpop.xlane.xlu0 %2000 }
0x11b2   : > { %3198 = vrcp.f32 %v2001_v1 }
0x11b9   : > { %v2004_v10 = vpop.xlane.xlu1 %2003 }
0x11ba   : > { %3200 = vrcp.f32 %v2004_v10 }
0x11bc   : > { %v3199_v4 = vpop.eup %3198 }
0x11bd   : > { %v2007_v8 = vpop.xlane.xlu0 %2006  ;;  %v2013_v11 = vmul.f32 %v3199_v4, %v3191_v58  ;;  %v2165_v13 = vpop.permute.xlu1 %2164 }
0x11be   : > { %3202 = vrcp.f32 %v2007_v8  ;;  %v2170_v18 = vsel %vm1171_vm5, %v2165_v13, 0  ;;  %v3150_v8 = vld [vmem:[%s3953_s15 + $0x40] sm:$0xff]  }
0x11bf   : > { %v2017_v15 = vpack.c.bf16 %v2013_v11, %v2013_v11  ;;  %v3151_v11 = vld [vmem:[%s3953_s15 + $0x48] sm:$0xff]   ;;  %v3154_v13 = vld [vmem:[%s3953_s15 + $0x60] sm:$0xff]  }
0x11c1   : > { %v2069_v12 = vpop.permute.xlu0 %2068 }
0x11c2   : > { %v2074_v2 = vsel %vm1171_vm5, %v2069_v12, 0  ;;  %v3152_v12 = vld [vmem:[%s3953_s15 + $0x50] sm:$0xff]  }
0x11c3   : > { %3004 = vmatpush3.bf16.msra.mxu1 %v2074_v2  ;;  %v3153_v2 = vld [vmem:[%s3953_s15 + $0x58] sm:$0xff]  }
0x11c4   : > { %v3201_v14 = vpop.eup %3200  ;;  %3015 = vmatprep.subr.bf16.mxu1 %v3277_v44 }
0x11c5   : > { %v2014_v17 = vmul.f32 %v3201_v14, %v3193_v61  ;;  %v3155_v14 = vld [vmem:[%s3953_s15 + $0x68] sm:$0xff]  }
0x11c6   : > { %3006 = vmatmul.mubr.msk.bf16.vlgmr.msra.gmra.mrb[44].mxu1 %vm924_vm3, %v2017_v15  ;;  %v3156_v15 = vld [vmem:[%s3953_s15 + $0x70] sm:$0xff]  }
0x11c7   : > { %3016 = vmatpush3.bf16.msra.mxu1 %v2170_v18  ;;  %v2018_v19 = vpack.c.bf16 %v2014_v17, %v2014_v17  ;;  %3017 = vmatprep.mubr.msk.bf16.mxu1 %vm3278_vm2, %v3277_v44  ;;  %v3157_v17 = vld [vmem:[%s3953_s15 + $0x78] sm:$0xff]   ;;  %v2764_v18 = vld [vmem:[%s3952_s14 + $0x1] ss:$0 sm:$0xff] }
0x11c8   : > { %v3203_v20 = vpop.eup %3202  ;;  %3029 = vmatprep.subr.bf16.mxu1 %v3277_v44 }
0x11c9   : > { %v2015_v21 = vmul.f32 %v3203_v20, %v3195_v63  ;;  %3012 = vmatmul.mubr.msk.bf16.vlgmr.msra.gmra.mrb[32].mxu0 %vm924_vm3, %v2018_v19  ;;  %v3148_v63 = vld [vmem:[%s3951_s13 + $0x10] sm:$0xff]  }
0x11ca   : > { %3025 = vmatprep.mubr.msk.bf16.mxu0 %vm3278_vm2, %v3277_v44  ;;  %3022 = vmatpush3.bf16.msra.mxu0 %v3146_v27 }
0x11cb   : > { %v2019_v22 = vpack.c.bf16 %v2015_v21, %v2015_v21  ;;  %3023 = vmatprep.subr.bf16.mxu0 %v3277_v44 }
0x11ce   : > { %3018 = vmatmul.mubr.msk.bf16.vlgmr.msra.gmra.mrb[48].mxu1 %vm924_vm3, %v2019_v22  ;;  %3024 = vmatpush3.bf16.msra.mxu0 %v3147_v28 }
0x11cf   : > { %3033 = vmatprep.mubr.msk.bf16.mxu1 %vm3278_vm2, %v3277_v44  ;;  %3037 = vmatprep.subr.bf16.mxu0 %v3277_v44 }
0x11d0   : > { %3030 = vmatpush3.bf16.msra.mxu1 %v3148_v63 }
0x11d1   : > { %3031 = vmatprep.subr.bf16.mxu1 %v3277_v44 }
0x1227   : > { %v2062_v23 = vpop.f32.mrb[28].mxu0 }
0x1228   : > { %v3001_v24 = vpop.f32.mrb[29].mxu0 }
0x1229   : > { %v2065_v25 = vpop.f32.mrb[30].mxu0 }
0x122a   : > { %v3002_v26 = vpop.f32.mrb[31].mxu0 }
0x1299   : > { %v2110_v29 = vpop.f32.mrb[44].mxu1 }
0x129a   : > { %2213 = vrot.lane.b32.xlu1 %v2110_v29, %s3991_s28  ;;  %v3007_v30 = vpop.f32.mrb[45].mxu1  ;;  %s3995_s28 = smov %s3994_s23 }
0x129b   : > { %v2113_v31 = vpop.f32.mrb[46].mxu1 }
0x129c   : > { %v3008_v32 = vpop.f32.mrb[47].mxu1  ;;  %v2158_v33 = vpop.f32.mrb[32].mxu0 }
0x129d   : > { %v3013_v34 = vpop.f32.mrb[33].mxu0  ;;  %2217 = vrot.lane.b32.xlu0 %v2158_v33, %s3992_s27  ;;  %v2794_v32 = vld [vmem:[%s3954_s16 + $0x1] ss:$0 sm:$0xff]  ;;  %s3898_s27 = scalar_lea.hbm %s3994_s23, %s2798_s0 }
0x129e   : > { %v2161_v35 = vpop.f32.mrb[34].mxu0 }
0x129f   : > { %v3014_v37 = vpop.f32.mrb[35].mxu0 }
0x12a1   : > { %v2206_v38 = vpop.f32.mrb[48].mxu1 }
0x12a2   : > { %2221 = vrot.lane.b32.xlu1 %v2206_v38, %s3993_s30  ;;  %v3019_v40 = vpop.f32.mrb[49].mxu1  ;;  %s2601_s30 = scalar_lea.sflag [#allocation3], %s620_s1 }
0x12a3   : > { %v2209_v41 = vpop.f32.mrb[50].mxu1 }
0x12a4   : > { %v3020_v42 = vpop.f32.mrb[51].mxu1 }
0x130c   : > { %v2214_v43 = vpop.permute.xlu1 %2213 }
0x130d   : > { %v2224_v46 = vsel %vm924_vm3, %v2062_v23, %v2214_v43 }
0x130f   : > { %v2218_v45 = vpop.permute.xlu0 %2217 }
0x1310   : > { %v2225_v47 = vsel %vm1372_vm6, %v2224_v46, %v2218_v45 }
0x1314   : > { %v2222_v48 = vpop.permute.xlu1 %2221 }
0x1315   : > { %v2226_v49 = vsel %vm1374_vm7, %v2225_v47, %v2222_v48  ;;  %v3158_v47 = vld [vmem:[%s3957_s19] sm:$0xff]   ;;  %v3159_v48 = vld [vmem:[%s3957_s19 + $0x8] sm:$0xff]  }
0x1316   : > { %v2227_v16 = vpack.c.bf16 %v2226_v49, %v2226_v49 }
0x1318   : > { %3026 = vmatmul.mubr.msk.bf16.vlgmr.msra.gmra.mrb[36].mxu0 %vm782_vm1, %v2227_v16 }
0x1319   : > { %3053 = vmatprep.mubr.msk.bf16.mxu0 %vm3278_vm2, %v3277_v44  ;;  %3038 = vmatpush3.bf16.msra.mxu0 %v3150_v8 }
0x131a   : > { %3039 = vmatprep.subr.bf16.mxu0 %v3277_v44 }
0x131d   : > { %3040 = vmatpush3.bf16.msra.mxu0 %v3151_v11 }
0x131e   : > { %3041 = vmatprep.subr.bf16.mxu0 %v3277_v44 }
0x1321   : > { %3042 = vmatpush3.bf16.msra.mxu0 %v3152_v12 }
0x1322   : > { %3043 = vmatprep.subr.bf16.mxu0 %v3277_v44 }
0x1325   : > { %3044 = vmatpush3.bf16.msra.mxu0 %v3153_v2 }
0x1326   : > { %3045 = vmatprep.subr.bf16.mxu0 %v3277_v44 }
0x1329   : > { %3046 = vmatpush3.bf16.msra.mxu0 %v3154_v13 }
0x132a   : > { %3047 = vmatprep.subr.bf16.mxu0 %v3277_v44 }
0x132d   : > { %3048 = vmatpush3.bf16.msra.mxu0 %v3155_v14 }
0x132e   : > { %3049 = vmatprep.subr.bf16.mxu0 %v3277_v44 }
0x1331   : > { %3050 = vmatpush3.bf16.msra.mxu0 %v3156_v15 }
0x1332   : > { %3051 = vmatprep.subr.bf16.mxu0 %v3277_v44 }
0x1335   : > { %3052 = vmatpush3.bf16.msra.mxu0 %v3157_v17 }
0x13eb   : > { %v2290_v51 = vpop.f32.mrb[36].mxu0 }
0x13ec   : > { %v2291_v52 = vadd.f32 %v2751_v50, %v2290_v51  ;;  %v3027_v53 = vpop.f32.mrb[37].mxu0 }
0x13ed   : > { %v2293_v54 = vpop.f32.mrb[38].mxu0 }
0x13ee   : > { %v3816_v55 = vadd.f32 %v2291_v52, %v3691_v39  ;;  %v3028_v56 = vpop.f32.mrb[39].mxu0  ;;  %v3149_v39 = vld [vmem:[%s3951_s13 + $0x18] sm:$0xff]   ;;  %v2521_v52 = vld [vmem:[%s3955_s17] sm:$0x1] }
0x13ef   : > { %3032 = vmatpush3.bf16.msra.mxu1 %v3149_v39  ;;  %v2522_v54 = vld [vmem:[%s3956_s18] sm:$0x1] }
0x13f0   : > { %v2301_v57 = vsel %vm782_vm1, %v3816_v55, 0.0  ;;  %3057 = vmatprep.subr.bf16.mxu1 %v3277_v44 }
0x13f1   : > { %2302 = vadd.xlane.f32.xlu0 %v2301_v57 }
0x147e   : > { %v2303_v58 = vpop.xlane.xlu0 %2302 }
0x147f   : > { %v2304_v59 = vmul.f32 0.03125, %v2303_v58 }
0x1481   : > { %v2305_v60 = vsub.f32 %v3816_v55, %v2304_v59 }
0x1483   : > { %v2306_v61 = vmul.f32 %v2305_v60, %v2305_v60 }
0x1485   : > { %v2307_v62 = vsel %vm782_vm1, %v2306_v61, 0.0 }
0x1486   : > { %2308 = vadd.xlane.f32.xlu1 %v2307_v62 }
0x1513   : > { %v2309_v0 = vpop.xlane.xlu1 %2308 }
0x1514   : > { %v2310_v36 = vmul.f32 0.03125, %v2309_v0 }
0x1516   : > { %v2311_v3 = vadd.f32 1e-05, %v2310_v36 }
0x1518   : > { %3204 = vrsqrt.f32 %v2311_v3 }
0x1522   : > { %v3205_v5 = vpop.eup %3204 }
0x1523   : > { %v2313_v7 = vmul.f32 %v3205_v5, %v2305_v60 }
0x1525   : > { %v2320_v1 = vmul.f32 %v2757_v6, %v2313_v7 }
0x1527   : > { %v2327_v10 = vadd.f32 %v2758_v9, %v2320_v1 }
0x1529   : > { %v2328_v4 = vpack.c.bf16 %v2327_v10, %v2327_v10 }
0x152b   : > { %3034 = vmatmul.mubr.msk.bf16.vlgmr.msra.gmra.mrb[52].mxu1 %vm782_vm1, %v2328_v4 }
0x152c   : > { %3061 = vmatprep.mubr.msk.bf16.mxu1 %vm3278_vm2, %v3277_v44  ;;  %3058 = vmatpush3.bf16.msra.mxu1 %v3158_v47 }
0x152d   : > { %3059 = vmatprep.subr.bf16.mxu1 %v3277_v44 }
0x1530   : > { %3060 = vmatpush3.bf16.msra.mxu1 %v3159_v48 }
0x15fe   : > { %v2391_v19 = vpop.f32.mrb[52].mxu1 }
0x15ff   : > { %v2392_v20 = vadd.f32 %v2764_v18, %v2391_v19  ;;  %v3035_v21 = vpop.f32.mrb[53].mxu1 }
0x1600   : > { %v2394_v22 = vpop.f32.mrb[54].mxu1 }
0x1601   : > { %v2768_v23 = vmul.f32 -1.702, %v2392_v20  ;;  %v3036_v24 = vpop.f32.mrb[55].mxu1 }
0x1603   : > { %v2399_v25 = vmul.f32 1.442695, %v2768_v23 }
0x1605   : > { %3206 = vpow2.f32 %v2399_v25 }
0x160f   : > { %v3207_v26 = vpop.eup %3206 }
0x1610   : > { %v2401_v27 = vadd.f32 1.0, %v3207_v26 }
0x1612   : > { %3208 = vrcp.f32 %v2401_v27 }
0x161c   : > { %v3209_v28 = vpop.eup %3208 }
0x161d   : > { %v2404_v29 = vmul.f32 %v3209_v28, %v2392_v20 }
0x161f   : > { %v2405_v30 = vpack.c.bf16 %v2404_v29, %v2404_v29 }
0x1621   : > { %3054 = vmatmul.mubr.bf16.vlgmr.msra.gmra.mrb[40].mxu0 %v2405_v30 }
0x16f4   : > { %v2505_v31 = vpop.f32.mrb[40].mxu0 }
0x16f5   : > { %v2511_v33 = vadd.f32 %v2505_v31, %v3816_v55  ;;  %v3055_v34 = vpop.f32.mrb[41].mxu0 }
0x16f6   : > { %v2508_v35 = vpop.f32.mrb[42].mxu0 }
0x16f7   : > { %v3056_v37 = vpop.f32.mrb[43].mxu0  ;;  %v2520_v38 = vadd.f32 %v2794_v32, %v2511_v33 }
0x16f9   : > { %v2524_v40 = vsel %vm2523_vm8, %v2520_v38, 0.0 }
0x16fa   : > { %2525 = vadd.xlane.f32.xlu0 %v2524_v40 }
0x1787   : > { %v2526_v41 = vpop.xlane.xlu0 %2525 }
0x1788   : > { %v2527_v42 = vmul.f32 0.03125, %v2526_v41 }
0x178a   : > { %v2528_v43 = vsub.f32 %v2520_v38, %v2527_v42 }
0x178c   : > { %v2529_v45 = vmul.f32 %v2528_v43, %v2528_v43 }
0x178e   : > { %v2530_v46 = vsel %vm2523_vm8, %v2529_v45, 0.0 }
0x178f   : > { %2531 = vadd.xlane.f32.xlu0 %v2530_v46 }
0x181c   : > { %v2532_v49 = vpop.xlane.xlu0 %2531 }
0x181d   : > { %v2533_v16 = vmul.f32 0.03125, %v2532_v49 }
0x181f   : > { %v2534_v50 = vadd.f32 1e-05, %v2533_v16 }
0x1821   : > { %3210 = vrsqrt.f32 %v2534_v50 }
0x182b   : > { %v3211_v51 = vpop.eup %3210 }
0x182c   : > { %v2536_v53 = vmul.f32 %v3211_v51, %v2528_v43 }
0x182e   : > { %v2537_v55 = vmul.f32 %v2536_v53, %v2521_v52 }
0x1830   : > { %v2538_v56 = vadd.f32 %v2537_v55, %v2522_v54 }
0x1832   : > { %v2539_v44 = vpack.c.bf16 %v2538_v56, %v2538_v56 }
0x1834   : > { %3062 = vmatmul.mubr.msk.bf16.vlgmr.msra.gmra.mrb[56].mxu1 %vm782_vm1, %v2539_v44 }
0x1907   : > { %v2593_v57 = vpop.f32.mrb[56].mxu1 }
0x1908   : > { %2599 = vst [vmem:[%s621_s3] sm:$0x1] %v2593_v57  ;;  %v3063_v58 = vpop.f32.mrb[57].mxu1 }
0x1909   : > { %v2596_v59 = vpop.f32.mrb[58].mxu1 }
0x190a   : > { %3225 = shalt.err (!%p3222_p3)
}
0x190b   : > { %s3226_s1 = scalar_lea.hbm %s3898_s27, 16  ;;  %s3230_s25 = scalar_lea.hbm %s3995_s28, 32 }
0x190c   : > { %p3227_p4 = scmp.ne.s32.totalorder %s3898_s27, %s3226_s1  ;;  %p3231_p9 = scmp.lt.u32.totalorder %s3898_s27, %s3995_s28 }
0x190d   : > { %p3232_p10 = scmp.lt.u32.totalorder %s3230_s25, %s3226_s1  ;;  %p3234_p12 = scmp.lt.u32.totalorder %s3226_s1, %s3898_s27 }
0x190e   : > { %p3228_p7 = pnand %p3227_p4, %p3432_p5 }
0x190f   : > { %p3233_p11 = por %p3232_p10, %p3231_p9 }
0x1910   : > { %p3229_p8 = pneg %p3228_p7 }
0x1911   : > { %p3235_p13 = por %p3234_p12, %p3233_p11 }
0x1913   : > { %p3236_p0 = pnand %p3235_p13, %p3229_p8 }
0x1915   : > { %3239 = shalt.err (!%p3236_p0)
}
0x1916   : > { %3065 = dma.vmem_to_hbm [thread:$0]  (%p3432_p5), %s3893_s20, 16, %s3898_s27, %s2601_s30   ;;  %v3064_v60 = vpop.f32.mrb[59].mxu1 }
0x1917 PF: > { %s3996_s5 = sld [smem:[#allocation7_spill]]  ;;  %s3997_s24 = sld [smem:[#allocation5_spill]] }
0x191d   : > { %p3071_p1 = scmp.ge.s32.totalorder %s3996_s5, 2  ;;  %s2625_s29 = sand.u32 1, %s3997_s24  }
0x191e   : > { %s2626_s3 = scalar_lea.sflag [#allocation3], %s2625_s29 }
0x191f   : > { %p3068_p2 = pnand %p3071_p1, %p3436_p6 }
0x1921   : > { %3257 = dma.done.wait (!%p3068_p2), %s2626_s3, 16  }
0x1922   : > { %3259 = vsyncadd (!%p3068_p2), %s2626_s3, 4294967280  ;;  %s3999_s24 = sld [smem:[#allocation8_spill]]  ;;  %s4000_s0 = sld [smem:[#allocation6_spill]] }
0x1923   : > { %s4001_s23 = sld [smem:[#allocation9_spill]]  ;;  %s4002_s1 = smov %s3266_s22 }
0x1928   : > { %p30_p3 = scmp.ge.s32.totalorder %s3999_s24, 4   ;;  %s4003_s22 = smov %s4000_s0 }
0x192a   :  { %32 = sbr.rel (!%p30_p3) target bundleno = 11 (0xb), region = 147 }
0x1931   :  { %2630 = vsyncpa [#allocation3], 1 }
0x1932   :  { %2632 = vsyncpa [#allocation3 + $0x1], 1 }

</bundles_post_ra>
